<compile_context>
chip_gen: v7x
topology: tpu7x:2x2x1
jax: 0.10.0
libtpu: 0.0.40
codegen_flags: <defaults>
</compile_context>

<pallas_src>
import math
from functools import partial

import jax
import jax.numpy as jnp
from jax.experimental import pallas as pl
from jax.experimental.pallas import tpu as pltpu

LANE = 128


# ----------------------------------------------------------------------------
# kernel: depthwise 3x3, stride 1, on a spatially pre-padded NHWC tile
# ----------------------------------------------------------------------------
def _dwconv_kernel(H, W, x_ref, w_ref, b_ref, o_ref):
    # x_ref: (1, H+2, W+2, cb)  zero-padded input tile (channels on lanes)
    # w_ref: (9, cb)            taps in row-major (kh*3 + kw) order
    # b_ref: (1, cb)            bias
    # o_ref: (1, H, W, cb)
    xp = x_ref[0]                                  # single full-tile load
    acc = None
    for tap in range(9):                           # static unroll: 9 VPU FMAs
        kh, kw = divmod(tap, 3)
        patch = xp[kh:kh + H, kw:kw + W, :]        # shifted spatial window
        term = patch * w_ref[tap]                  # (cb,) broadcast over lanes
        acc = term if acc is None else acc + term
    o_ref[0] = (acc + b_ref[0]).astype(o_ref.dtype)


# ----------------------------------------------------------------------------
# wrapper: NCHW -> lane-dense NHWC, pad, tile channels, call pallas
# ----------------------------------------------------------------------------
def dwconv_forward(x_nchw, weight, bias):
    """x_nchw: (B, C, H, W) f32; weight: (C, 1, 3, 3); bias: (C,)."""
    B, C, H, W = x_nchw.shape

    # NCHW -> NHWC so channels sit on the 128-wide lane axis.
    x = jnp.transpose(x_nchw, (0, 2, 3, 1)).astype(jnp.float32)

    # Pad channels up to a multiple of 128 (lane-dense loads/stores).
    Cp = max(LANE, ((C + LANE - 1) // LANE) * LANE)
    if Cp != C:
        x = jnp.pad(x, ((0, 0), (0, 0), (0, 0), (0, Cp - C)))

    # Spatial zero-padding (conv padding=1) done once in the wrapper so the
    # kernel only needs shifted static slices.
    xp = jnp.pad(x, ((0, 0), (1, 1), (1, 1), (0, 0)))
    Hp, Wp = H + 2, W + 2

    # weight (C,1,3,3) -> (9, Cp): w9[kh*3+kw, c] = weight[c, 0, kh, kw]
    w9 = jnp.transpose(weight.reshape(C, 9), (1, 0)).astype(jnp.float32)
    b1 = bias.astype(jnp.float32)
    if Cp != C:
        w9 = jnp.pad(w9, ((0, 0), (0, Cp - C)))
        b1 = jnp.pad(b1, (0, Cp - C))
    b2 = b1.reshape(1, Cp)

    # Channel tile: multiple of 128; 256 when possible (fills v6e/v7x vregs
    # better), while still giving the grid >1 step to shard on v7x megacore.
    c_blk = 256 if (Cp % 256 == 0) else LANE
    n_c = Cp // c_blk

    kernel = partial(_dwconv_kernel, H, W)

    out_nhwc = pl.pallas_call(
        kernel,
        out_shape=jax.ShapeDtypeStruct((B, H, W, Cp), jnp.float32),
        grid=(B, n_c),
        in_specs=[
            pl.BlockSpec((1, Hp, Wp, c_blk), lambda b, c: (b, 0, 0, c)),  # x
            pl.BlockSpec((9, c_blk), lambda b, c: (0, c)),                # taps
            pl.BlockSpec((1, c_blk), lambda b, c: (0, c)),                # bias
        ],
        out_specs=pl.BlockSpec((1, H, W, c_blk), lambda b, c: (b, 0, 0, c)),
        compiler_params=pltpu.CompilerParams(
            dimension_semantics=("parallel", "parallel")),
    )(xp, w9, b2)

    # Drop channel padding, NHWC -> NCHW.
    out_nhwc = out_nhwc[..., :C]
    return jnp.transpose(out_nhwc, (0, 3, 1, 2))


# ----------------------------------------------------------------------------
# pure-JAX reference (lax depthwise conv) for a correctness check
# ----------------------------------------------------------------------------
def dwconv_reference(x_nchw, weight, bias):
    out = jax.lax.conv_general_dilated(
        x_nchw, weight,
        window_strides=(1, 1),
        padding=((1, 1), (1, 1)),
        dimension_numbers=("NCHW", "OIHW", "NCHW"),
        feature_group_count=x_nchw.shape[1])
    return out + bias[None, :, None, None]


# ----------------------------------------------------------------------------
# main
# ----------------------------------------------------------------------------
if __name__ == "__main__":
    # Small shapes consistent with the module (default dim=768 scaled down to
    # a lane-friendly dim=128):  x: (B=2, C=128, H=16, W=16)
    B, C, H, W = 2, 128, 16, 16

    key = jax.random.PRNGKey(0)
    kx, kw, kb = jax.random.split(key, 3)
    x = jax.random.normal(kx, (B, C, H, W), jnp.float32)

    # torch Conv2d default init: kaiming_uniform(a=sqrt(5)) on fan_in = 1*3*3
    bound = 1.0 / math.sqrt(9.0)
    weight = jax.random.uniform(kw, (C, 1, 3, 3), jnp.float32, -bound, bound)
    bias = jax.random.uniform(kb, (C,), jnp.float32, -bound, bound)

    out = jax.block_until_ready(dwconv_forward(x, weight, bias))
    ref = jax.block_until_ready(dwconv_reference(x, weight, bias))

    assert out.shape == (B, C, H, W)
    assert bool(jnp.allclose(out, ref, atol=1e-4, rtol=1e-4)), (
        "Pallas DWConv output does not match JAX reference")

    print("KERNEL_OK")
</pallas_src>

<mosaic_0001>
module attributes {stable_mosaic.version = 11 : i64} {
  func.func @_dwconv_kernel(%arg0: i32, %arg1: i32, %arg2: memref<1x18x18x128xf32, #tpu.memory_space<vmem>>, %arg3: memref<9x128xf32, #tpu.memory_space<vmem>>, %arg4: memref<1x128xf32, #tpu.memory_space<vmem>>, %arg5: memref<1x16x16x128xf32, #tpu.memory_space<vmem>>) attributes {dimension_semantics = [#tpu.dimension_semantics<parallel>, #tpu.dimension_semantics<parallel>], iteration_bounds = array<i64: 2, 1>, scalar_prefetch = 0 : i64, scratch_operands = 0 : i64, tpu.core_type = #tpu.core_type<tc>, window_params = [{transform_indices = @transform_0, window_bounds = array<i64: 1, 18, 18, 128>}, {transform_indices = @transform_1, window_bounds = array<i64: 9, 128>}, {transform_indices = @transform_2, window_bounds = array<i64: 1, 128>}, {transform_indices = @transform_3, window_bounds = array<i64: 1, 16, 16, 128>}]} {
    %c0 = arith.constant 0 : index
    %c0_0 = arith.constant 0 : index
    %c0_1 = arith.constant 0 : index
    %c0_2 = arith.constant 0 : index
    %0 = vector.load %arg2[%c0, %c0_0, %c0_1, %c0_2] : memref<1x18x18x128xf32, #tpu.memory_space<vmem>>, vector<1x18x18x128xf32>
    %1 = vector.shape_cast %0 : vector<1x18x18x128xf32> to vector<18x18x128xf32>
    %2 = vector.extract_strided_slice %1 {offsets = [0, 0, 0], sizes = [16, 16, 128], strides = [1, 1, 1]} : vector<18x18x128xf32> to vector<16x16x128xf32>
    %c0_3 = arith.constant 0 : index
    %c0_4 = arith.constant 0 : index
    %3 = vector.load %arg3[%c0_3, %c0_4] : memref<9x128xf32, #tpu.memory_space<vmem>>, vector<1x128xf32>
    %4 = vector.shape_cast %3 : vector<1x128xf32> to vector<128xf32>
    %5 = vector.shape_cast %4 : vector<128xf32> to vector<1x1x128xf32>
    %6 = vector.broadcast %5 : vector<1x1x128xf32> to vector<16x16x128xf32>
    %7 = arith.mulf %2, %6 : vector<16x16x128xf32>
    %8 = vector.extract_strided_slice %1 {offsets = [0, 1, 0], sizes = [16, 16, 128], strides = [1, 1, 1]} : vector<18x18x128xf32> to vector<16x16x128xf32>
    %c1 = arith.constant 1 : index
    %c0_5 = arith.constant 0 : index
    %9 = vector.load %arg3[%c1, %c0_5] : memref<9x128xf32, #tpu.memory_space<vmem>>, vector<1x128xf32>
    %10 = vector.shape_cast %9 : vector<1x128xf32> to vector<128xf32>
    %11 = vector.shape_cast %10 : vector<128xf32> to vector<1x1x128xf32>
    %12 = vector.broadcast %11 : vector<1x1x128xf32> to vector<16x16x128xf32>
    %13 = arith.mulf %8, %12 : vector<16x16x128xf32>
    %14 = arith.addf %7, %13 : vector<16x16x128xf32>
    %15 = vector.extract_strided_slice %1 {offsets = [0, 2, 0], sizes = [16, 16, 128], strides = [1, 1, 1]} : vector<18x18x128xf32> to vector<16x16x128xf32>
    %c2 = arith.constant 2 : index
    %c0_6 = arith.constant 0 : index
    %16 = vector.load %arg3[%c2, %c0_6] : memref<9x128xf32, #tpu.memory_space<vmem>>, vector<1x128xf32>
    %17 = vector.shape_cast %16 : vector<1x128xf32> to vector<128xf32>
    %18 = vector.shape_cast %17 : vector<128xf32> to vector<1x1x128xf32>
    %19 = vector.broadcast %18 : vector<1x1x128xf32> to vector<16x16x128xf32>
    %20 = arith.mulf %15, %19 : vector<16x16x128xf32>
    %21 = arith.addf %14, %20 : vector<16x16x128xf32>
    %22 = vector.extract_strided_slice %1 {offsets = [1, 0, 0], sizes = [16, 16, 128], strides = [1, 1, 1]} : vector<18x18x128xf32> to vector<16x16x128xf32>
    %c3 = arith.constant 3 : index
    %c0_7 = arith.constant 0 : index
    %23 = vector.load %arg3[%c3, %c0_7] : memref<9x128xf32, #tpu.memory_space<vmem>>, vector<1x128xf32>
    %24 = vector.shape_cast %23 : vector<1x128xf32> to vector<128xf32>
    %25 = vector.shape_cast %24 : vector<128xf32> to vector<1x1x128xf32>
    %26 = vector.broadcast %25 : vector<1x1x128xf32> to vector<16x16x128xf32>
    %27 = arith.mulf %22, %26 : vector<16x16x128xf32>
    %28 = arith.addf %21, %27 : vector<16x16x128xf32>
    %29 = vector.extract_strided_slice %1 {offsets = [1, 1, 0], sizes = [16, 16, 128], strides = [1, 1, 1]} : vector<18x18x128xf32> to vector<16x16x128xf32>
    %c4 = arith.constant 4 : index
    %c0_8 = arith.constant 0 : index
    %30 = vector.load %arg3[%c4, %c0_8] : memref<9x128xf32, #tpu.memory_space<vmem>>, vector<1x128xf32>
    %31 = vector.shape_cast %30 : vector<1x128xf32> to vector<128xf32>
    %32 = vector.shape_cast %31 : vector<128xf32> to vector<1x1x128xf32>
    %33 = vector.broadcast %32 : vector<1x1x128xf32> to vector<16x16x128xf32>
    %34 = arith.mulf %29, %33 : vector<16x16x128xf32>
    %35 = arith.addf %28, %34 : vector<16x16x128xf32>
    %36 = vector.extract_strided_slice %1 {offsets = [1, 2, 0], sizes = [16, 16, 128], strides = [1, 1, 1]} : vector<18x18x128xf32> to vector<16x16x128xf32>
    %c5 = arith.constant 5 : index
    %c0_9 = arith.constant 0 : index
    %37 = vector.load %arg3[%c5, %c0_9] : memref<9x128xf32, #tpu.memory_space<vmem>>, vector<1x128xf32>
    %38 = vector.shape_cast %37 : vector<1x128xf32> to vector<128xf32>
    %39 = vector.shape_cast %38 : vector<128xf32> to vector<1x1x128xf32>
    %40 = vector.broadcast %39 : vector<1x1x128xf32> to vector<16x16x128xf32>
    %41 = arith.mulf %36, %40 : vector<16x16x128xf32>
    %42 = arith.addf %35, %41 : vector<16x16x128xf32>
    %43 = vector.extract_strided_slice %1 {offsets = [2, 0, 0], sizes = [16, 16, 128], strides = [1, 1, 1]} : vector<18x18x128xf32> to vector<16x16x128xf32>
    %c6 = arith.constant 6 : index
    %c0_10 = arith.constant 0 : index
    %44 = vector.load %arg3[%c6, %c0_10] : memref<9x128xf32, #tpu.memory_space<vmem>>, vector<1x128xf32>
    %45 = vector.shape_cast %44 : vector<1x128xf32> to vector<128xf32>
    %46 = vector.shape_cast %45 : vector<128xf32> to vector<1x1x128xf32>
    %47 = vector.broadcast %46 : vector<1x1x128xf32> to vector<16x16x128xf32>
    %48 = arith.mulf %43, %47 : vector<16x16x128xf32>
    %49 = arith.addf %42, %48 : vector<16x16x128xf32>
    %50 = vector.extract_strided_slice %1 {offsets = [2, 1, 0], sizes = [16, 16, 128], strides = [1, 1, 1]} : vector<18x18x128xf32> to vector<16x16x128xf32>
    %c7 = arith.constant 7 : index
    %c0_11 = arith.constant 0 : index
    %51 = vector.load %arg3[%c7, %c0_11] : memref<9x128xf32, #tpu.memory_space<vmem>>, vector<1x128xf32>
    %52 = vector.shape_cast %51 : vector<1x128xf32> to vector<128xf32>
    %53 = vector.shape_cast %52 : vector<128xf32> to vector<1x1x128xf32>
    %54 = vector.broadcast %53 : vector<1x1x128xf32> to vector<16x16x128xf32>
    %55 = arith.mulf %50, %54 : vector<16x16x128xf32>
    %56 = arith.addf %49, %55 : vector<16x16x128xf32>
    %57 = vector.extract_strided_slice %1 {offsets = [2, 2, 0], sizes = [16, 16, 128], strides = [1, 1, 1]} : vector<18x18x128xf32> to vector<16x16x128xf32>
    %c8 = arith.constant 8 : index
    %c0_12 = arith.constant 0 : index
    %58 = vector.load %arg3[%c8, %c0_12] : memref<9x128xf32, #tpu.memory_space<vmem>>, vector<1x128xf32>
    %59 = vector.shape_cast %58 : vector<1x128xf32> to vector<128xf32>
    %60 = vector.shape_cast %59 : vector<128xf32> to vector<1x1x128xf32>
    %61 = vector.broadcast %60 : vector<1x1x128xf32> to vector<16x16x128xf32>
    %62 = arith.mulf %57, %61 : vector<16x16x128xf32>
    %63 = arith.addf %56, %62 : vector<16x16x128xf32>
    %c0_13 = arith.constant 0 : index
    %c0_14 = arith.constant 0 : index
    %64 = vector.load %arg4[%c0_13, %c0_14] : memref<1x128xf32, #tpu.memory_space<vmem>>, vector<1x128xf32>
    %65 = vector.shape_cast %64 : vector<1x128xf32> to vector<128xf32>
    %66 = vector.shape_cast %65 : vector<128xf32> to vector<1x1x128xf32>
    %67 = vector.broadcast %66 : vector<1x1x128xf32> to vector<16x16x128xf32>
    %68 = arith.addf %63, %67 : vector<16x16x128xf32>
    %c0_15 = arith.constant 0 : index
    %c0_16 = arith.constant 0 : index
    %c0_17 = arith.constant 0 : index
    %c0_18 = arith.constant 0 : index
    %69 = vector.load %arg5[%c0_15, %c0_16, %c0_17, %c0_18] : memref<1x16x16x128xf32, #tpu.memory_space<vmem>>, vector<1x16x16x128xf32>
    %70 = vector.shape_cast %69 : vector<1x16x16x128xf32> to vector<16x16x128xf32>
    %71 = vector.shape_cast %68 : vector<16x16x128xf32> to vector<1x16x16x128xf32>
    tpu.vector_store %arg5[%c0_15, %c0_16, %c0_17, %c0_18], %71 {strides = array<i32>} : memref<1x16x16x128xf32, #tpu.memory_space<vmem>>, vector<1x16x16x128xf32>,
    return
  }
  func.func @transform_0(%arg0: i32, %arg1: i32) -> (i32, i32, i32, i32) {
    %c0_i32 = arith.constant 0 : i32
    %c0_i32_0 = arith.constant 0 : i32
    %c0_i32_1 = arith.constant 0 : i32
    return %arg0, %c0_i32, %c0_i32_0, %arg1 : i32, i32, i32, i32
  }
  func.func @transform_1(%arg0: i32, %arg1: i32) -> (i32, i32) {
    %c0_i32 = arith.constant 0 : i32
    %c0_i32_0 = arith.constant 0 : i32
    return %c0_i32, %arg1 : i32, i32
  }
  func.func @transform_2(%arg0: i32, %arg1: i32) -> (i32, i32) {
    %c0_i32 = arith.constant 0 : i32
    %c0_i32_0 = arith.constant 0 : i32
    return %c0_i32, %arg1 : i32, i32
  }
  func.func @transform_3(%arg0: i32, %arg1: i32) -> (i32, i32, i32, i32) {
    %c0_i32 = arith.constant 0 : i32
    %c0_i32_0 = arith.constant 0 : i32
    %c0_i32_1 = arith.constant 0 : i32
    return %arg0, %c0_i32, %c0_i32_0, %arg1 : i32, i32, i32, i32
  }
}

</mosaic_0001>

<bundles_post_ra>
// kernel: tpu_custom_call.1
= control target key start
LH: loop header
LB: loop body
LE: loop exit
PB: predicated region body
PF: predicated region fallthrough
CT: control target
= control target key end

     0   :  { %8 = vsyncpa [#allocation3], 0  ;;  %s3972_s0 = inlined_call_operand.vmem [shape: f32[2,18,18,128], index: 0, kind: input, shape index: {}]   ;;  %s3973_s1 = inlined_call_operand.vmem [shape: f32[9,128], index: 1, kind: input, shape index: {}]   ;;  %s3974_s2 = inlined_call_operand.vmem [shape: f32[1,128], index: 2, kind: input, shape index: {}]   ;;  %s3975_s3 = inlined_call_operand.hbm [shape: f32[2,16,16,128], index: 3, kind: output, shape index: {}]  }
   0x1   :  { %10 = vsyncpa [#allocation3 + $0x1], 0  ;;  %s2323_s12 = smov 0   ;;  %s2325_s13 = smov 0  }
   0x2   :  { %s2327_s14 = smov 0   ;;  %s2329_s15 = smov 0  }
   0x3   :  { %s2331_s16 = smov 0   ;;  %s2333_s17 = smov 0  }
   0x4 LB: > { %s2117_s18 = sadd.s32 4294967295, %s2298_s17   ;;  %s2118_s19 = sadd.s32 4294967294, %s2298_s17   ;;  %s2298_s17 = sphi %s2333_s17, %s16_s17   ;;  %s2294_s16 = sphi %s2331_s16, %s3982_s16   ;;  %s2290_s15 = sphi %s2329_s15, %s3981_s15   ;;  %s2286_s14 = sphi %s2327_s14, %s3980_s14   ;;  %s2282_s13 = sphi %s2325_s13, %s3979_s13   ;;  %s2278_s12 = sphi %s2323_s12, %s3978_s12  }
   0x5   : > { %s28_s20 = sadd.s32 1, %s2294_s16  ;;  %s117_s21 = sadd.s32 1, %s2286_s14 }
   0x6   : > { %p30_p0 = scmp.ge.s32.totalorder %s28_s20, 2  ;;  %p127_p1 = scmp.ne.s32.totalorder %s2286_s14, %s2282_s13 }
   0x7   : > { %p128_p2 = scmp.eq.s32.totalorder %s2117_s18, 1  ;;  %p133_p3 = scmp.ne.s32.totalorder %s2282_s13, %s2278_s12 }
   0x8   : > { %s3984_s20 = smov (%p30_p0, %s28_s20), 0  ;;  %p134_p5 = scmp.eq.s32.totalorder %s2118_s19, 1 }
   0x9   : > { %p2363_p4 = por %p128_p2, %p127_p1  ;;  %s112_s23 = ssub.s32 %s2294_s16, %s3984_s20 }
   0xa   : > { %p2123_p6 = scmp.ge.s32.totalorder %s2298_s17, 1  ;;  %p115_p7 = scmp.eq.s32.totalorder %s112_s23, 0 }
   0xb   : > { %p2370_p8 = por %p134_p5, %p133_p3  ;;  %p176_p9 = scmp.lt.s32.totalorder %s2298_s17, 3 }
   0xc   : > { %s2376_s25 = scalar_select %p115_p7, %s2286_s14, %s117_s21  }
   0xd   : > { %p177_p10 = pnand %p2123_p6, %p176_p9 }
   0xe   : > { %p210_p11 = scmp.lt.s32.totalorder (!%p177_p10), %s2290_s15, 1  ;;  %v2383_v0 = vld [vmem:[%s3973_s1 + $0x1] ss:$0 sm:$0xff] (!%p177_p10)  ;;  %v2388_v1 = vld [vmem:[%s3973_s1 + $0x2] ss:$0 sm:$0xff] (!%p177_p10)  ;;  %vm417_vm0 = vcmask (!%p177_p10), 1046528  }
   0xf   : > { %180 = sbr.rel (%p177_p10) target bundleno = 343 (0x157), region = 32  ;;  %v2398_v2 = vld [vmem:[%s3973_s1] ss:$0 sm:$0xff] (!%p177_p10)  ;;  %v2403_v3 = vld [vmem:[%s3973_s1 + $0x4] ss:$0 sm:$0xff] (!%p177_p10)  ;;  %vm663_vm1 = vcmask (!%p177_p10), 1045504  }
  0x10   : > { %v2410_v6 = vld [vmem:[%s3973_s1 + $0x5] ss:$0 sm:$0xff] (!%p177_p10)  ;;  %v2426_v14 = vld [vmem:[%s3973_s1 + $0x3] ss:$0 sm:$0xff] (!%p177_p10)  ;;  %v2435_v17 = vld [vmem:[%s3973_s1 + $0x7] ss:$0 sm:$0xff] (!%p177_p10) }
  0x11   : > { %v2442_v22 = vld [vmem:[%s3973_s1 + $0x6] ss:$0 sm:$0xff] (!%p177_p10)  ;;  %v2452_v28 = vld [vmem:[%s3973_s1 + $0x8] ss:$0 sm:$0xff] (!%p177_p10)  ;;  %s207_s5 = sand.u32 (!%p177_p10), 1, %s2282_s13  }
  0x12   : > { %s2124_s6 = sshll.u32 (!%p177_p10), %s207_s5, 8  ;;  %s3926_s19 = scalar_lea.sflag (!%p177_p10), [#allocation3], %s207_s5 }
  0x13   : > { %s2551_s10 = scalar_lea.vmem (!%p177_p10), [#allocation2], %s2124_s6 }
  0x14   : > { %s2012_s8 = sshll.u32 (!%p177_p10), %s2551_s10, 4  ;;  %s3920_s8 = int_to_ptr.vmem [resolvable:$true] %s2012_s8 }
  0x15   : > { %s2220_s21 = scalar_lea.vmem (!%p177_p10), %s3920_s8, 4096 }
  0x16   : > { %s211_s26 = scalar_select %p210_p11, %s2290_s15, 1 }
  0x17   : > { %p2221_p12 = scmp.ne.s32.totalorder %s3920_s8, %s2220_s21 }
  0x18   : > { %s2142_s27 = smul.u32 432, %s211_s26 }
  0x19   : > { %p2222_p13 = pnand %p2221_p12, %p2363_p4 }
  0x1a   : > { %s2393_s7 = scalar_lea.vmem %s3972_s0, %s2142_s27 }
  0x1b   : > { %v225_v4 = vld [vmem:[%s2393_s7] sm:$0xff]  ;;  %v226_v5 = vld [vmem:[%s2393_s7 + $0x8] sm:$0xff]  ;;  %v2413_v7 = vld [vmem:[%s2393_s7 + $0x18] sm:$0xff]  ;;  %p2223_p0 = pneg %p2222_p13 }
  0x1c   : > { %v2416_v8 = vld [vmem:[%s2393_s7 + $0x20] sm:$0xff]  ;;  %v321_v9 = vmul.f32 %v2383_v0, %v225_v4  ;;  %v322_v10 = vmul.f32 %v2383_v0, %v226_v5  ;;  %v567_v11 = vmul.f32 %v2388_v1, %v225_v4  ;;  %v284_v12 = vmul.f32 %v2398_v2, %v225_v4  ;;  %v2445_v23 = vld [vmem:[%s2393_s7 + $0x30] sm:$0xff]  ;;  %v2461_v34 = vld [vmem:[%s2393_s7 + $0x38] sm:$0xff] }
  0x1d   : > { %v568_v13 = vmul.f32 %v2388_v1, %v226_v5  ;;  %v882_v15 = vmul.f32 %v2403_v3, %v2413_v7  ;;  %v883_v16 = vmul.f32 %v2403_v3, %v2416_v8  ;;  %v1127_v21 = vmul.f32 %v2410_v6, %v2413_v7  ;;  %v227_v33 = vld [vmem:[%s2393_s7 + $0x10] sm:$0x3]  ;;  %v2479_v50 = vld [vmem:[%s2393_s7 + $0x28] sm:$0x3]  ;;  %v2492_v62 = vld [vmem:[%s2393_s7 + $0x40] sm:$0x3] }
  0x1e   : > { %v418_v18 = vrot.slane %v321_v9, 1  ;;  %v419_v19 = vrot.slane %v322_v10, 1  ;;  %v664_v20 = vrot.slane %v567_v11, 2  ;;  %v1128_v27 = vmul.f32 %v2410_v6, %v2416_v8 }
  0x1f   : > { %v665_v24 = vrot.slane %v568_v13, 2  ;;  %v978_v25 = vrot.slane %v882_v15, 1  ;;  %v979_v26 = vrot.slane %v883_v16, 1  ;;  %v813_v30 = vmul.f32 %v2426_v14, %v2413_v7 }
  0x20   : > { %v420_v29 = vsel %vm417_vm0, %v418_v18, %v419_v19  ;;  %v1223_v31 = vrot.slane %v1127_v21, 2  ;;  %v1441_v32 = vmul.f32 %v2435_v17, %v2445_v23  ;;  %v1224_v37 = vrot.slane %v1128_v27, 2 }
  0x21   : > { %v530_v35 = vadd.f32 %v420_v29, %v284_v12  ;;  %v666_v36 = vsel %vm663_vm1, %v664_v20, %v665_v24  ;;  %v1372_v38 = vmul.f32 %v2442_v22, %v2445_v23  ;;  %v1442_v39 = vmul.f32 %v2435_v17, %v2461_v34 }
  0x22   : > { %v1537_v40 = vrot.slane %v1441_v32, 1  ;;  %v1686_v41 = vmul.f32 %v2452_v28, %v2445_v23  ;;  %v2472_v42 = vmul.f32 %v2452_v28, %v2461_v34  ;;  %v980_v44 = vsel %vm417_vm0, %v978_v25, %v979_v26 }
  0x23   : > { %v776_v43 = vadd.f32 %v666_v36, %v530_v35  ;;  %v285_v45 = vmul.f32 %v2398_v2, %v226_v5  ;;  %v323_v46 = vmul.f32 %v2383_v0, %v227_v33  ;;  %v1538_v47 = vrot.slane %v1442_v39, 1 }
  0x24   : > { %v1782_v48 = vrot.slane %v1686_v41, 2  ;;  %v1783_v49 = vrot.slane %v2472_v42, 2  ;;  %v569_v51 = vmul.f32 %v2388_v1, %v227_v33  ;;  %v1225_v53 = vsel %vm663_vm1, %v1223_v31, %v1224_v37 }
  0x25   : > { %v845_v52 = vadd.f32 %v813_v30, %v776_v43  ;;  %v421_v54 = vrot.slane %v323_v46, 1  ;;  %v884_v55 = vmul.f32 %v2403_v3, %v2479_v50  ;;  %v1539_v56 = vsel %vm417_vm0, %v1537_v40, %v1538_v47 }
  0x26   : > { %v667_v57 = vrot.slane %v569_v51, 2  ;;  %v814_v58 = vmul.f32 %v2426_v14, %v2416_v8  ;;  %v1129_v59 = vmul.f32 %v2410_v6, %v2479_v50  ;;  %v1784_v61 = vsel %vm663_vm1, %v1782_v48, %v1783_v49 }
  0x27   : > { %v1090_v60 = vadd.f32 %v980_v44, %v845_v52  ;;  %v422_v63 = vsel %vm417_vm0, %v419_v19, %v421_v54  ;;  %v981_v4 = vrot.slane %v884_v55, 1  ;;  %v1443_v11 = vmul.f32 %v2435_v17, %v2492_v62 }
  0x28   : > { %v531_v5 = vadd.f32 %v422_v63, %v285_v45  ;;  %v668_v9 = vsel %vm663_vm1, %v665_v24, %v667_v57  ;;  %v1226_v10 = vrot.slane %v1129_v59, 2  ;;  %v1373_v15 = vmul.f32 %v2442_v22, %v2461_v34  ;;  %v2547_v59 = vld [vmem:[%s2393_s7 + $0x50] sm:$0xff] }
  0x29   : > { %v1335_v12 = vadd.f32 %v1225_v53, %v1090_v60  ;;  %v982_v13 = vsel %vm417_vm0, %v979_v26, %v981_v4  ;;  %v1688_v16 = vmul.f32 %v2452_v28, %v2492_v62  ;;  %v1540_v19 = vrot.slane %v1443_v11, 1  ;;  %v2541_v53 = vld [vmem:[%s2393_s7 + $0x48] sm:$0xff] }
  0x2a   : > { %v777_v18 = vadd.f32 %v668_v9, %v531_v5  ;;  %v286_v20 = vmul.f32 %v2398_v2, %v2413_v7  ;;  %v324_v21 = vmul.f32 %v2383_v0, %v2413_v7  ;;  %v1227_v25 = vsel %vm663_vm1, %v1224_v37, %v1226_v10 }
  0x2b   : > { %v1404_v24 = vadd.f32 %v1372_v38, %v1335_v12  ;;  %v2511_v26 = vmul.f32 %v2383_v0, %v2416_v8  ;;  %v570_v27 = vmul.f32 %v2388_v1, %v2413_v7  ;;  %v1785_v30 = vrot.slane %v1688_v16, 2  ;;  %v2526_v7 = vld [vmem:[%s3974_s2] ss:$0 sm:$0xff] }
  0x2c   : > { %v846_v29 = vadd.f32 %v814_v58, %v777_v18  ;;  %v423_v31 = vrot.slane %v324_v21, 1  ;;  %v2517_v32 = vmul.f32 %v2388_v1, %v2416_v8  ;;  %v1541_v35 = vsel %vm417_vm0, %v1538_v47, %v1540_v19 }
  0x2d   : > { %v1649_v33 = vadd.f32 %v1539_v56, %v1404_v24  ;;  %v424_v36 = vrot.slane %v2511_v26, 1  ;;  %v669_v37 = vrot.slane %v570_v27, 2  ;;  %v815_v40 = vmul.f32 %v2426_v14, %v2445_v23 }
  0x2e   : > { %v1091_v38 = vadd.f32 %v982_v13, %v846_v29  ;;  %v670_v39 = vrot.slane %v2517_v32, 2  ;;  %v885_v41 = vmul.f32 %v2403_v3, %v2445_v23  ;;  %v886_v44 = vmul.f32 %v2403_v3, %v2461_v34 }
  0x2f   : > { %v1894_v42 = vadd.f32 %v1784_v61, %v1649_v33  ;;  %v425_v43 = vsel %vm417_vm0, %v423_v31, %v424_v36  ;;  %v1130_v45 = vmul.f32 %v2410_v6, %v2445_v23  ;;  %v1131_v55 = vmul.f32 %v2410_v6, %v2461_v34  ;;  %v2581_v33 = vld [vmem:[%s2393_s7 + $0x58] sm:$0x3] }
  0x30   : > { %v1336_v46 = vadd.f32 %v1227_v25, %v1091_v38  ;;  %v532_v47 = vadd.f32 %v425_v43, %v286_v20  ;;  %v671_v48 = vsel %vm663_vm1, %v669_v37, %v670_v39  ;;  %v983_v51 = vrot.slane %v885_v41, 1 }
  0x31   : > { %v1933_v52 = vadd.f32 %v2526_v7, %v1894_v42  ;;  %v984_v54 = vrot.slane %v886_v44, 1  ;;  %v1228_v56 = vrot.slane %v1130_v45, 2  ;;  %v1786_v58 = vsel %vm663_vm1, %v1783_v49, %v1785_v30 }
  0x32   : > { %v1405_v57 = vadd.f32 %v1373_v15, %v1336_v46  ;;  %v778_v60 = vadd.f32 %v671_v48, %v532_v47  ;;  %v1444_v61 = vmul.f32 %v2435_v17, %v2541_v53  ;;  %v1229_v4 = vrot.slane %v1131_v55, 2 }
  0x33   : > { %1965 = vst [vmem:[%s2551_s10] sm:$0xff] %v1933_v52  ;;  %v985_v63 = vsel %vm417_vm0, %v983_v51, %v984_v54  ;;  %v2557_v5 = vmul.f32 %v2435_v17, %v2547_v59  ;;  %v1689_v49 = vmul.f32 %v2452_v28, %v2541_v53  ;;  %v2563_v12 = vmul.f32 %v2452_v28, %v2547_v59 }
  0x34   : > { %v1650_v9 = vadd.f32 %v1541_v35, %v1405_v57  ;;  %v847_v10 = vadd.f32 %v815_v40, %v778_v60  ;;  %v1542_v11 = vrot.slane %v1444_v61, 1  ;;  %v1230_v13 = vsel %vm663_vm1, %v1228_v56, %v1229_v4 }
  0x35   : > { %v1374_v15 = vmul.f32 %v2442_v22, %v2541_v53  ;;  %v1543_v16 = vrot.slane %v2557_v5, 1  ;;  %v1787_v20 = vrot.slane %v1689_v49, 2  ;;  %v326_v21 = vmul.f32 %v2383_v0, %v2479_v50 }
  0x36   : > { %v1895_v18 = vadd.f32 %v1786_v58, %v1650_v9  ;;  %v1092_v19 = vadd.f32 %v985_v63, %v847_v10  ;;  %v1788_v24 = vrot.slane %v2563_v12, 2  ;;  %v287_v25 = vmul.f32 %v2398_v2, %v2416_v8 }
  0x37   : > { %v572_v26 = vmul.f32 %v2388_v1, %v2479_v50  ;;  %v887_v27 = vmul.f32 %v2403_v3, %v2492_v62  ;;  %v1544_v31 = vsel %vm417_vm0, %v1542_v11, %v1543_v16  ;;  %v426_v32 = vrot.slane %v326_v21, 1 }
  0x38   : > { %v1934_v29 = vadd.f32 %v2526_v7, %v1895_v18  ;;  %v1337_v30 = vadd.f32 %v1230_v13, %v1092_v19  ;;  %v816_v37 = vmul.f32 %v2426_v14, %v2461_v34  ;;  %v1132_v8 = vmul.f32 %v2410_v6, %v2492_v62 }
  0x39   : > { %v672_v35 = vrot.slane %v572_v26, 2  ;;  %v986_v38 = vrot.slane %v887_v27, 1  ;;  %v427_v40 = vsel %vm417_vm0, %v424_v36, %v426_v32  ;;  %v1446_v41 = vmul.f32 %v2435_v17, %v2581_v33  ;;  %v2633_v32 = vld [vmem:[%s2393_s7 + $0x68] sm:$0xff] }
  0x3a   : > { %1966 = vst [vmem:[%s2551_s10 + $0x8] sm:$0xff] %v1934_v29  ;;  %v1406_v50 = vadd.f32 %v1374_v15, %v1337_v30  ;;  %v1691_v42 = vmul.f32 %v2452_v28, %v2581_v33  ;;  %v1789_v43 = vsel %vm663_vm1, %v1787_v20, %v1788_v24  ;;  %v533_v44 = vadd.f32 %v427_v40, %v287_v25  ;;  %v2629_v29 = vld [vmem:[%s2393_s7 + $0x60] sm:$0xff] }
  0x3b   : > { %v673_v45 = vsel %vm663_vm1, %v670_v39, %v672_v35  ;;  %v1231_v46 = vrot.slane %v1132_v8, 2  ;;  %v987_v48 = vsel %vm417_vm0, %v984_v54, %v986_v38  ;;  %v1375_v36 = vmul.f32 %v2442_v22, %v2547_v59 }
  0x3c   : > { %v1651_v47 = vadd.f32 %v1544_v31, %v1406_v50  ;;  %v1545_v51 = vrot.slane %v1446_v41, 1  ;;  %v779_v52 = vadd.f32 %v673_v45, %v533_v44  ;;  %v1790_v55 = vrot.slane %v1691_v42, 2 }
  0x3d   : > { %v327_v56 = vmul.f32 %v2383_v0, %v2445_v23  ;;  %v2604_v57 = vmul.f32 %v2383_v0, %v2461_v34  ;;  %v1232_v39 = vsel %vm663_vm1, %v1229_v4, %v1231_v46  ;;  %v288_v54 = vmul.f32 %v2398_v2, %v2445_v23 }
  0x3e   : > { %v1896_v58 = vadd.f32 %v1789_v43, %v1651_v47  ;;  %v573_v60 = vmul.f32 %v2388_v1, %v2445_v23  ;;  %v848_v61 = vadd.f32 %v816_v37, %v779_v52  ;;  %v574_v49 = vmul.f32 %v2388_v1, %v2461_v34 }
  0x3f   : > { %v428_v63 = vrot.slane %v327_v56, 1  ;;  %v429_v5 = vrot.slane %v2604_v57, 1  ;;  %v817_v4 = vmul.f32 %v2426_v14, %v2541_v53  ;;  %v888_v11 = vmul.f32 %v2403_v3, %v2541_v53 }
  0x40   : > { %v1935_v9 = vadd.f32 %v2526_v7, %v1896_v58  ;;  %v674_v10 = vrot.slane %v573_v60, 2  ;;  %v1093_v13 = vadd.f32 %v987_v48, %v848_v61  ;;  %v675_v15 = vrot.slane %v574_v49, 2  ;;  %v2667_v49 = vld [vmem:[%s2393_s7 + $0x70] sm:$0x3] }
  0x41   : > { %v430_v23 = vsel %vm417_vm0, %v428_v63, %v429_v5  ;;  %v889_v18 = vmul.f32 %v2403_v3, %v2547_v59  ;;  %v988_v20 = vrot.slane %v888_v11, 1  ;;  %v1133_v21 = vmul.f32 %v2410_v6, %v2541_v53 }
  0x42   : > { %1967 = vst [vmem:[%s2551_s10 + $0x10] sm:$0xff] %v1935_v9  ;;  %v534_v19 = vadd.f32 %v430_v23, %v288_v54  ;;  %v1134_v25 = vmul.f32 %v2410_v6, %v2547_v59  ;;  %v1338_v26 = vadd.f32 %v1232_v39, %v1093_v13  ;;  %v1546_v27 = vsel %vm417_vm0, %v1543_v16, %v1545_v51 }
  0x43   : > { %v676_v30 = vsel %vm663_vm1, %v674_v10, %v675_v15  ;;  %v989_v31 = vrot.slane %v889_v18, 1  ;;  %v1233_v37 = vrot.slane %v1133_v21, 2  ;;  %v1447_v8 = vmul.f32 %v2435_v17, %v2629_v29 }
  0x44   : > { %v780_v35 = vadd.f32 %v676_v30, %v534_v19  ;;  %v1234_v38 = vrot.slane %v1134_v25, 2  ;;  %v1407_v50 = vadd.f32 %v1375_v36, %v1338_v26  ;;  %v2640_v41 = vmul.f32 %v2435_v17, %v2633_v32 }
  0x45   : > { %v990_v40 = vsel %vm417_vm0, %v988_v20, %v989_v31  ;;  %v1692_v16 = vmul.f32 %v2452_v28, %v2629_v29  ;;  %v1791_v42 = vsel %vm663_vm1, %v1788_v24, %v1790_v55  ;;  %v1547_v44 = vrot.slane %v1447_v8, 1 }
  0x46   : > { %v849_v43 = vadd.f32 %v817_v4, %v780_v35  ;;  %v2649_v45 = vmul.f32 %v2452_v28, %v2633_v32  ;;  %v1652_v46 = vadd.f32 %v1546_v27, %v1407_v50  ;;  %v1235_v47 = vsel %vm663_vm1, %v1233_v37, %v1234_v38 }
  0x47   : > { %v1376_v48 = vmul.f32 %v2442_v22, %v2629_v29  ;;  %v1548_v36 = vrot.slane %v2640_v41, 1  ;;  %v1792_v52 = vrot.slane %v1692_v16, 2  ;;  %v329_v12 = vmul.f32 %v2383_v0, %v2492_v62 }
  0x48   : > { %v1094_v51 = vadd.f32 %v990_v40, %v849_v43  ;;  %v575_v24 = vmul.f32 %v2388_v1, %v2492_v62  ;;  %v1897_v55 = vadd.f32 %v1791_v42, %v1652_v46  ;;  %v1793_v56 = vrot.slane %v2649_v45, 2 }
  0x49   : > { %v289_v57 = vmul.f32 %v2398_v2, %v2461_v34  ;;  %v890_v58 = vmul.f32 %v2403_v3, %v2581_v33  ;;  %v1549_v54 = vsel %vm417_vm0, %v1547_v44, %v1548_v36  ;;  %v431_v60 = vrot.slane %v329_v12, 1 }
  0x4a   : > { %v1339_v39 = vadd.f32 %v1235_v47, %v1094_v51  ;;  %v677_v61 = vrot.slane %v575_v24, 2  ;;  %v1936_v63 = vadd.f32 %v2526_v7, %v1897_v55  ;;  %v818_v62 = vmul.f32 %v2426_v14, %v2547_v59 }
  0x4b   : > { %v991_v9 = vrot.slane %v890_v58, 1  ;;  %v1135_v10 = vmul.f32 %v2410_v6, %v2581_v33  ;;  %v432_v4 = vsel %vm417_vm0, %v429_v5, %v431_v60  ;;  %v1449_v13 = vmul.f32 %v2435_v17, %v2667_v49 }
  0x4c   : > { %v1408_v34 = vadd.f32 %v1376_v48, %v1339_v39  ;;  %v678_v11 = vsel %vm663_vm1, %v675_v15, %v677_v61  ;;  %1968 = vst [vmem:[%s2551_s10 + $0x18] sm:$0xff] %v1936_v63  ;;  %v1794_v23 = vsel %vm663_vm1, %v1792_v52, %v1793_v56  ;;  %v535_v18 = vadd.f32 %v432_v4, %v289_v57  ;;  %v2715_v39 = vld [vmem:[%s2393_s7 + $0x78] sm:$0xff]  ;;  %v2719_v61 = vld [vmem:[%s2393_s7 + $0x80] sm:$0xff] }
  0x4d   : > { %v1236_v19 = vrot.slane %v1135_v10, 2  ;;  %v1694_v20 = vmul.f32 %v2452_v28, %v2667_v49  ;;  %v992_v25 = vsel %vm417_vm0, %v989_v31, %v991_v9  ;;  %v1377_v5 = vmul.f32 %v2442_v22, %v2633_v32 }
  0x4e   : > { %v1653_v21 = vadd.f32 %v1549_v54, %v1408_v34  ;;  %v330_v15 = vmul.f32 %v2383_v0, %v2541_v53  ;;  %v781_v26 = vadd.f32 %v678_v11, %v535_v18  ;;  %v1550_v27 = vrot.slane %v1449_v13, 1 }
  0x4f   : > { %v290_v30 = vmul.f32 %v2398_v2, %v2541_v53  ;;  %v2692_v35 = vmul.f32 %v2383_v0, %v2547_v59  ;;  %v1237_v8 = vsel %vm663_vm1, %v1234_v38, %v1236_v19  ;;  %v576_v50 = vmul.f32 %v2388_v1, %v2541_v53 }
  0x50   : > { %v1898_v37 = vadd.f32 %v1794_v23, %v1653_v21  ;;  %v433_v31 = vrot.slane %v330_v15, 1  ;;  %v850_v40 = vadd.f32 %v818_v62, %v781_v26  ;;  %v1795_v41 = vrot.slane %v1694_v20, 2 }
  0x51   : > { %v434_v16 = vrot.slane %v2692_v35, 1  ;;  %v577_v42 = vmul.f32 %v2388_v1, %v2547_v59  ;;  %v679_v44 = vrot.slane %v576_v50, 2  ;;  %v819_v46 = vmul.f32 %v2426_v14, %v2629_v29 }
  0x52   : > { %v1937_v43 = vadd.f32 %v2526_v7, %v1898_v37  ;;  %v891_v38 = vmul.f32 %v2403_v3, %v2629_v29  ;;  %v1095_v47 = vadd.f32 %v992_v25, %v850_v40  ;;  %v892_v51 = vmul.f32 %v2403_v3, %v2633_v32 }
  0x53   : > { %v435_v53 = vsel %vm417_vm0, %v433_v31, %v434_v16  ;;  %v680_v48 = vrot.slane %v577_v42, 2  ;;  %v1136_v24 = vmul.f32 %v2410_v6, %v2629_v29  ;;  %v1137_v55 = vmul.f32 %v2410_v6, %v2633_v32  ;;  %v2753_v42 = vld [vmem:[%s2393_s7 + $0x88] sm:$0x3] }
  0x54   : > { %1969 = vst [vmem:[%s2551_s10 + $0x20] sm:$0xff] %v1937_v43  ;;  %v536_v52 = vadd.f32 %v435_v53, %v290_v30  ;;  %v993_v12 = vrot.slane %v891_v38, 1  ;;  %v1340_v57 = vadd.f32 %v1237_v8, %v1095_v47  ;;  %v1551_v58 = vsel %vm417_vm0, %v1548_v36, %v1550_v27 }
  0x55   : > { %v681_v54 = vsel %vm663_vm1, %v679_v44, %v680_v48  ;;  %v994_v60 = vrot.slane %v892_v51, 1  ;;  %v1238_v62 = vrot.slane %v1136_v24, 2  ;;  %v1239_v9 = vrot.slane %v1137_v55, 2 }
  0x56   : > { %v782_v63 = vadd.f32 %v681_v54, %v536_v52  ;;  %v1450_v10 = vmul.f32 %v2435_v17, %v2715_v39  ;;  %v1409_v34 = vadd.f32 %v1377_v5, %v1340_v57  ;;  %v2726_v11 = vmul.f32 %v2435_v17, %v2719_v61 }
  0x57   : > { %v995_v4 = vsel %vm417_vm0, %v993_v12, %v994_v60  ;;  %v1695_v36 = vmul.f32 %v2452_v28, %v2715_v39  ;;  %v1796_v13 = vsel %vm663_vm1, %v1793_v56, %v1795_v41  ;;  %v2735_v19 = vmul.f32 %v2452_v28, %v2719_v61 }
  0x58   : > { %v851_v23 = vadd.f32 %v819_v46, %v782_v63  ;;  %v1552_v18 = vrot.slane %v1450_v10, 1  ;;  %v1654_v20 = vadd.f32 %v1551_v58, %v1409_v34  ;;  %v1240_v21 = vsel %vm663_vm1, %v1238_v62, %v1239_v9 }
  0x59   : > { %v1378_v25 = vmul.f32 %v2442_v22, %v2715_v39  ;;  %v1553_v5 = vrot.slane %v2726_v11, 1  ;;  %v1797_v26 = vrot.slane %v1695_v36, 2  ;;  %v332_v45 = vmul.f32 %v2383_v0, %v2581_v33 }
  0x5a   : > { %v1096_v15 = vadd.f32 %v995_v4, %v851_v23  ;;  %v578_v56 = vmul.f32 %v2388_v1, %v2581_v33  ;;  %v1899_v27 = vadd.f32 %v1796_v13, %v1654_v20  ;;  %v1798_v30 = vrot.slane %v2735_v19, 2 }
  0x5b   : > { %v291_v35 = vmul.f32 %v2398_v2, %v2547_v59  ;;  %v893_v37 = vmul.f32 %v2403_v3, %v2667_v49  ;;  %v1554_v31 = vsel %vm417_vm0, %v1552_v18, %v1553_v5  ;;  %v436_v50 = vrot.slane %v332_v45, 1 }
  0x5c   : > { %v1341_v8 = vadd.f32 %v1240_v21, %v1096_v15  ;;  %v682_v40 = vrot.slane %v578_v56, 2  ;;  %v1938_v41 = vadd.f32 %v2526_v7, %v1899_v27  ;;  %v820_v33 = vmul.f32 %v2426_v14, %v2633_v32 }
  0x5d   : > { %v996_v43 = vrot.slane %v893_v37, 1  ;;  %v1138_v44 = vmul.f32 %v2410_v6, %v2667_v49  ;;  %v437_v46 = vsel %vm417_vm0, %v434_v16, %v436_v50  ;;  %v1452_v47 = vmul.f32 %v2435_v17, %v2753_v42 }
  0x5e   : > { %v1410_v59 = vadd.f32 %v1378_v25, %v1341_v8  ;;  %v683_v38 = vsel %vm663_vm1, %v680_v48, %v682_v40  ;;  %1970 = vst [vmem:[%s2551_s10 + $0x28] sm:$0xff] %v1938_v41  ;;  %v1799_v53 = vsel %vm663_vm1, %v1797_v26, %v1798_v30  ;;  %v537_v51 = vadd.f32 %v437_v46, %v291_v35  ;;  %v2801_v8 = vld [vmem:[%s2393_s7 + $0x90] sm:$0xff]  ;;  %v2805_v40 = vld [vmem:[%s2393_s7 + $0x98] sm:$0xff] }
  0x5f   : > { %v1241_v52 = vrot.slane %v1138_v44, 2  ;;  %v1697_v12 = vmul.f32 %v2452_v28, %v2753_v42  ;;  %v997_v55 = vsel %vm417_vm0, %v994_v60, %v996_v43  ;;  %v1379_v16 = vmul.f32 %v2442_v22, %v2719_v61 }
  0x60   : > { %v1655_v24 = vadd.f32 %v1554_v31, %v1410_v59  ;;  %v333_v48 = vmul.f32 %v2383_v0, %v2629_v29  ;;  %v783_v57 = vadd.f32 %v683_v38, %v537_v51  ;;  %v1555_v58 = vrot.slane %v1452_v47, 1 }
  0x61   : > { %v292_v54 = vmul.f32 %v2398_v2, %v2629_v29  ;;  %v2778_v63 = vmul.f32 %v2383_v0, %v2633_v32  ;;  %v1242_v10 = vsel %vm663_vm1, %v1239_v9, %v1241_v52  ;;  %v579_v34 = vmul.f32 %v2388_v1, %v2629_v29 }
  0x62   : > { %v1900_v62 = vadd.f32 %v1799_v53, %v1655_v24  ;;  %v438_v60 = vrot.slane %v333_v48, 1  ;;  %v852_v4 = vadd.f32 %v820_v33, %v783_v57  ;;  %v1800_v11 = vrot.slane %v1697_v12, 2 }
  0x63   : > { %v439_v36 = vrot.slane %v2778_v63, 1  ;;  %v580_v13 = vmul.f32 %v2388_v1, %v2633_v32  ;;  %v684_v18 = vrot.slane %v579_v34, 2  ;;  %v821_v20 = vmul.f32 %v2426_v14, %v2715_v39 }
  0x64   : > { %v1939_v23 = vadd.f32 %v2526_v7, %v1900_v62  ;;  %v894_v9 = vmul.f32 %v2403_v3, %v2715_v39  ;;  %v1097_v21 = vadd.f32 %v997_v55, %v852_v4  ;;  %v895_v15 = vmul.f32 %v2403_v3, %v2719_v61 }
  0x65   : > { %v440_v29 = vsel %vm417_vm0, %v438_v60, %v439_v36  ;;  %v685_v25 = vrot.slane %v580_v13, 2  ;;  %v1139_v56 = vmul.f32 %v2410_v6, %v2715_v39  ;;  %v1140_v27 = vmul.f32 %v2410_v6, %v2719_v61  ;;  %v2839_v13 = vld [vmem:[%s2393_s7 + $0xa0] sm:$0x3] }
  0x66   : > { %1971 = vst [vmem:[%s2551_s10 + $0x30] sm:$0xff] %v1939_v23  ;;  %v538_v26 = vadd.f32 %v440_v29, %v292_v54  ;;  %v998_v45 = vrot.slane %v894_v9, 1  ;;  %v1342_v35 = vadd.f32 %v1242_v10, %v1097_v21  ;;  %v1556_v37 = vsel %vm417_vm0, %v1553_v5, %v1555_v58 }
  0x67   : > { %v686_v31 = vsel %vm663_vm1, %v684_v18, %v685_v25  ;;  %v999_v50 = vrot.slane %v895_v15, 1  ;;  %v1243_v33 = vrot.slane %v1139_v56, 2  ;;  %v1244_v43 = vrot.slane %v1140_v27, 2 }
  0x68   : > { %v784_v41 = vadd.f32 %v686_v31, %v538_v26  ;;  %v1453_v44 = vmul.f32 %v2435_v17, %v2801_v8  ;;  %v1411_v59 = vadd.f32 %v1379_v16, %v1342_v35  ;;  %v2812_v38 = vmul.f32 %v2435_v17, %v2805_v40 }
  0x69   : > { %v1000_v46 = vsel %vm417_vm0, %v998_v45, %v999_v50  ;;  %v1698_v5 = vmul.f32 %v2452_v28, %v2801_v8  ;;  %v1801_v47 = vsel %vm663_vm1, %v1798_v30, %v1800_v11  ;;  %v2821_v52 = vmul.f32 %v2452_v28, %v2805_v40 }
  0x6a   : > { %v853_v53 = vadd.f32 %v821_v20, %v784_v41  ;;  %v1557_v51 = vrot.slane %v1453_v44, 1  ;;  %v1656_v12 = vadd.f32 %v1556_v37, %v1411_v59  ;;  %v1245_v24 = vsel %vm663_vm1, %v1243_v33, %v1244_v43 }
  0x6b   : > { %v1380_v55 = vmul.f32 %v2442_v22, %v2801_v8  ;;  %v1558_v16 = vrot.slane %v2812_v38, 1  ;;  %v1802_v57 = vrot.slane %v1698_v5, 2  ;;  %v335_v19 = vmul.f32 %v2383_v0, %v2667_v49 }
  0x6c   : > { %v1098_v48 = vadd.f32 %v1000_v46, %v853_v53  ;;  %v581_v30 = vmul.f32 %v2388_v1, %v2667_v49  ;;  %v1901_v58 = vadd.f32 %v1801_v47, %v1656_v12  ;;  %v1803_v54 = vrot.slane %v2821_v52, 2 }
  0x6d   : > { %v293_v63 = vmul.f32 %v2398_v2, %v2633_v32  ;;  %v896_v62 = vmul.f32 %v2403_v3, %v2753_v42  ;;  %v1559_v60 = vsel %vm417_vm0, %v1557_v51, %v1558_v16  ;;  %v441_v34 = vrot.slane %v335_v19, 1 }
  0x6e   : > { %v1343_v10 = vadd.f32 %v1245_v24, %v1098_v48  ;;  %v687_v4 = vrot.slane %v581_v30, 2  ;;  %v1940_v11 = vadd.f32 %v2526_v7, %v1901_v58  ;;  %v822_v49 = vmul.f32 %v2426_v14, %v2719_v61 }
  0x6f   : > { %v1001_v23 = vrot.slane %v896_v62, 1  ;;  %v1141_v18 = vmul.f32 %v2410_v6, %v2753_v42  ;;  %v442_v20 = vsel %vm417_vm0, %v439_v36, %v441_v34  ;;  %v1455_v21 = vmul.f32 %v2435_v17, %v2839_v13 }
  0x70   : > { %v1412_v32 = vadd.f32 %v1380_v55, %v1343_v10  ;;  %v688_v9 = vsel %vm663_vm1, %v685_v25, %v687_v4  ;;  %1972 = vst [vmem:[%s2551_s10 + $0x38] sm:$0xff] %v1940_v11  ;;  %v1804_v29 = vsel %vm663_vm1, %v1802_v57, %v1803_v54  ;;  %v539_v15 = vadd.f32 %v442_v20, %v293_v63  ;;  %v2887_v10 = vld [vmem:[%s2393_s7 + $0xa8] sm:$0xff]  ;;  %v2891_v4 = vld [vmem:[%s2393_s7 + $0xb0] sm:$0xff] }
  0x71   : > { %v1246_v26 = vrot.slane %v1141_v18, 2  ;;  %v1700_v45 = vmul.f32 %v2452_v28, %v2839_v13  ;;  %v1002_v27 = vsel %vm417_vm0, %v999_v50, %v1001_v23  ;;  %v1381_v36 = vmul.f32 %v2442_v22, %v2805_v40 }
  0x72   : > { %v1657_v56 = vadd.f32 %v1559_v60, %v1412_v32  ;;  %v336_v25 = vmul.f32 %v2383_v0, %v2715_v39  ;;  %v785_v35 = vadd.f32 %v688_v9, %v539_v15  ;;  %v1560_v37 = vrot.slane %v1455_v21, 1 }
  0x73   : > { %v294_v31 = vmul.f32 %v2398_v2, %v2715_v39  ;;  %v2864_v41 = vmul.f32 %v2383_v0, %v2719_v61  ;;  %v1247_v44 = vsel %vm663_vm1, %v1244_v43, %v1246_v26  ;;  %v582_v59 = vmul.f32 %v2388_v1, %v2715_v39 }
  0x74   : > { %v1902_v33 = vadd.f32 %v1804_v29, %v1657_v56  ;;  %v443_v50 = vrot.slane %v336_v25, 1  ;;  %v854_v46 = vadd.f32 %v822_v49, %v785_v35  ;;  %v1805_v38 = vrot.slane %v1700_v45, 2 }
  0x75   : > { %v444_v5 = vrot.slane %v2864_v41, 1  ;;  %v583_v47 = vmul.f32 %v2388_v1, %v2719_v61  ;;  %v689_v51 = vrot.slane %v582_v59, 2  ;;  %v823_v12 = vmul.f32 %v2426_v14, %v2801_v8 }
  0x76   : > { %v1941_v53 = vadd.f32 %v2526_v7, %v1902_v33  ;;  %v897_v43 = vmul.f32 %v2403_v3, %v2801_v8  ;;  %v1099_v24 = vadd.f32 %v1002_v27, %v854_v46  ;;  %v898_v48 = vmul.f32 %v2403_v3, %v2805_v40 }
  0x77   : > { %v445_v39 = vsel %vm417_vm0, %v443_v50, %v444_v5  ;;  %v690_v55 = vrot.slane %v583_v47, 2  ;;  %v1142_v30 = vmul.f32 %v2410_v6, %v2801_v8  ;;  %v1143_v58 = vmul.f32 %v2410_v6, %v2805_v40  ;;  %v2925_v47 = vld [vmem:[%s2393_s7 + $0xb8] sm:$0x3] }
  0x78   : > { %1973 = vst [vmem:[%s2551_s10 + $0x40] sm:$0xff] %v1941_v53  ;;  %v540_v57 = vadd.f32 %v445_v39, %v294_v31  ;;  %v1003_v19 = vrot.slane %v897_v43, 1  ;;  %v1344_v63 = vadd.f32 %v1247_v44, %v1099_v24  ;;  %v1561_v62 = vsel %vm417_vm0, %v1558_v16, %v1560_v37 }
  0x79   : > { %v691_v60 = vsel %vm663_vm1, %v689_v51, %v690_v55  ;;  %v1004_v34 = vrot.slane %v898_v48, 1  ;;  %v1248_v49 = vrot.slane %v1142_v30, 2  ;;  %v1249_v23 = vrot.slane %v1143_v58, 2 }
  0x7a   : > { %v786_v11 = vadd.f32 %v691_v60, %v540_v57  ;;  %v1456_v18 = vmul.f32 %v2435_v17, %v2887_v10  ;;  %v1413_v32 = vadd.f32 %v1381_v36, %v1344_v63  ;;  %v2898_v9 = vmul.f32 %v2435_v17, %v2891_v4 }
  0x7b   : > { %v1005_v20 = vsel %vm417_vm0, %v1003_v19, %v1004_v34  ;;  %v1701_v16 = vmul.f32 %v2452_v28, %v2887_v10  ;;  %v1806_v21 = vsel %vm663_vm1, %v1803_v54, %v1805_v38  ;;  %v2907_v26 = vmul.f32 %v2452_v28, %v2891_v4 }
  0x7c   : > { %v855_v29 = vadd.f32 %v823_v12, %v786_v11  ;;  %v1562_v15 = vrot.slane %v1456_v18, 1  ;;  %v1658_v45 = vadd.f32 %v1561_v62, %v1413_v32  ;;  %v1250_v56 = vsel %vm663_vm1, %v1248_v49, %v1249_v23 }
  0x7d   : > { %v1382_v27 = vmul.f32 %v2442_v22, %v2887_v10  ;;  %v1563_v36 = vrot.slane %v2898_v9, 1  ;;  %v1807_v35 = vrot.slane %v1701_v16, 2  ;;  %v338_v52 = vmul.f32 %v2383_v0, %v2753_v42 }
  0x7e   : > { %v1100_v25 = vadd.f32 %v1005_v20, %v855_v29  ;;  %v584_v54 = vmul.f32 %v2388_v1, %v2753_v42  ;;  %v1903_v37 = vadd.f32 %v1806_v21, %v1658_v45  ;;  %v1808_v31 = vrot.slane %v2907_v26, 2  ;;  %v3011_v26 = vld [vmem:[%s3973_s1 + $0x1] ss:$0 sm:$0xff] }
  0x7f   : > { %v295_v41 = vmul.f32 %v2398_v2, %v2719_v61  ;;  %v899_v33 = vmul.f32 %v2403_v3, %v2839_v13  ;;  %v1564_v50 = vsel %vm417_vm0, %v1562_v15, %v1563_v36  ;;  %v446_v59 = vrot.slane %v338_v52, 1 }
  0x80   : > { %v1345_v44 = vadd.f32 %v1250_v56, %v1100_v25  ;;  %v692_v46 = vrot.slane %v584_v54, 2  ;;  %v1942_v38 = vadd.f32 %v2526_v7, %v1903_v37  ;;  %v824_v42 = vmul.f32 %v2426_v14, %v2805_v40  ;;  %v2980_v54 = vld [vmem:[%s2393_s7 + $0xc0] sm:$0xff] }
  0x81   : > { %v1006_v53 = vrot.slane %v899_v33, 1  ;;  %v1144_v51 = vmul.f32 %v2410_v6, %v2839_v13  ;;  %v447_v12 = vsel %vm417_vm0, %v444_v5, %v446_v59  ;;  %v1458_v24 = vmul.f32 %v2435_v17, %v2925_v47 }
  0x82   : > { %v1414_v61 = vadd.f32 %v1382_v27, %v1345_v44  ;;  %v693_v43 = vsel %vm663_vm1, %v690_v55, %v692_v46  ;;  %1974 = vst [vmem:[%s2551_s10 + $0x48] sm:$0xff] %v1942_v38  ;;  %v1809_v39 = vsel %vm663_vm1, %v1807_v35, %v1808_v31  ;;  %v541_v48 = vadd.f32 %v447_v12, %v295_v41  ;;  %v2985_v41 = vld [vmem:[%s2393_s7 + $0xc8] sm:$0xff] }
  0x83   : > { %v1251_v57 = vrot.slane %v1144_v51, 2  ;;  %v1703_v19 = vmul.f32 %v2452_v28, %v2925_v47  ;;  %v1007_v58 = vsel %vm417_vm0, %v1004_v34, %v1006_v53  ;;  %v1383_v5 = vmul.f32 %v2442_v22, %v2891_v4 }
  0x84   : > { %v1659_v30 = vadd.f32 %v1564_v50, %v1414_v61  ;;  %v339_v55 = vmul.f32 %v2383_v0, %v2801_v8  ;;  %v787_v63 = vadd.f32 %v693_v43, %v541_v48  ;;  %v1565_v62 = vrot.slane %v1458_v24, 1 }
  0x85   : > { %v296_v60 = vmul.f32 %v2398_v2, %v2801_v8  ;;  %v2950_v11 = vmul.f32 %v2383_v0, %v2805_v40  ;;  %v1252_v18 = vsel %vm663_vm1, %v1249_v23, %v1251_v57  ;;  %v585_v32 = vmul.f32 %v2388_v1, %v2801_v8  ;;  %v3018_v57 = vld [vmem:[%s3973_s1 + $0x2] ss:$0 sm:$0xff] }
  0x86   : > { %v1904_v49 = vadd.f32 %v1809_v39, %v1659_v30  ;;  %v448_v34 = vrot.slane %v339_v55, 1  ;;  %v856_v20 = vadd.f32 %v824_v42, %v787_v63  ;;  %v1810_v9 = vrot.slane %v1703_v19, 2  ;;  %v3033_v55 = vld [vmem:[%s3973_s1 + $0x4] ss:$0 sm:$0xff] }
  0x87   : > { %v449_v16 = vrot.slane %v2950_v11, 1  ;;  %v2958_v21 = vmul.f32 %v2388_v1, %v2805_v40  ;;  %v694_v2 = vrot.slane %v585_v32, 2  ;;  %v825_v29 = vmul.f32 %v2426_v14, %v2887_v10 }
  0x88   : > { %v1943_v0 = vadd.f32 %v2526_v7, %v1904_v49  ;;  %v900_v23 = vmul.f32 %v2403_v3, %v2887_v10  ;;  %v1101_v8 = vadd.f32 %v1007_v58, %v856_v20  ;;  %v2969_v1 = vmul.f32 %v2403_v3, %v2891_v4  ;;  %v3026_v58 = vld [vmem:[%s3973_s1] ss:$0 sm:$0xff]  ;;  %v3054_v20 = vld [vmem:[%s3973_s1 + $0x5] ss:$0 sm:$0xff] }
  0x89   : > { %v450_v15 = vsel %vm417_vm0, %v448_v34, %v449_v16  ;;  %v695_v45 = vrot.slane %v2958_v21, 2  ;;  %v1145_v25 = vmul.f32 %v2410_v6, %v2887_v10  ;;  %v2976_v14 = vmul.f32 %v2410_v6, %v2891_v4 }
  0x8a   : > { %1975 = vst [vmem:[%s2551_s10 + $0x50] sm:$0xff] %v1943_v0  ;;  %v542_v56 = vadd.f32 %v450_v15, %v296_v60  ;;  %v1008_v27 = vrot.slane %v900_v23, 1  ;;  %v1346_v35 = vadd.f32 %v1252_v18, %v1101_v8  ;;  %v1566_v52 = vsel %vm417_vm0, %v1563_v36, %v1565_v62  ;;  %v3042_v18 = vld [vmem:[%s2393_s7 + $0xd0] sm:$0x3] }
  0x8b   : > { %v696_v37 = vsel %vm663_vm1, %v694_v2, %v695_v45  ;;  %v1009_v3 = vrot.slane %v2969_v1, 1  ;;  %v1253_v44 = vrot.slane %v1145_v25, 2  ;;  %v1254_v50 = vrot.slane %v2976_v14, 2 }
  0x8c   : > { %v788_v33 = vadd.f32 %v696_v37, %v542_v56  ;;  %v1459_v59 = vmul.f32 %v2435_v17, %v2980_v54  ;;  %v1415_v6 = vadd.f32 %v1383_v5, %v1346_v35  ;;  %v2993_v36 = vmul.f32 %v2435_v17, %v2985_v41 }
  0x8d   : > { %v1010_v46 = vsel %vm417_vm0, %v1008_v27, %v1009_v3  ;;  %v1704_v38 = vmul.f32 %v2452_v28, %v2980_v54  ;;  %v1811_v42 = vsel %vm663_vm1, %v1808_v31, %v1810_v9  ;;  %v3002_v61 = vmul.f32 %v2452_v28, %v2985_v41  ;;  %v3077_v27 = vld [vmem:[%s3973_s1 + $0x6] ss:$0 sm:$0xff] }
  0x8e   : > { %v857_v53 = vadd.f32 %v825_v29, %v788_v33  ;;  %v1567_v51 = vrot.slane %v1459_v59, 1  ;;  %v1660_v12 = vadd.f32 %v1566_v52, %v1415_v6  ;;  %v1255_v43 = vsel %vm663_vm1, %v1253_v44, %v1254_v50  ;;  %v3063_v29 = vld [vmem:[%s3973_s1 + $0x7] ss:$0 sm:$0xff] }
  0x8f   : > { %v1384_v17 = vmul.f32 %v2442_v22, %v2980_v54  ;;  %v1568_v24 = vrot.slane %v2993_v36, 1  ;;  %v1812_v48 = vrot.slane %v1704_v38, 2  ;;  %v341_v31 = vmul.f32 %v3011_v26, %v2839_v13 }
  0x90   : > { %v1102_v39 = vadd.f32 %v1010_v46, %v857_v53  ;;  %v587_v22 = vmul.f32 %v3018_v57, %v2839_v13  ;;  %v1905_v19 = vadd.f32 %v1811_v42, %v1660_v12  ;;  %v1813_v30 = vrot.slane %v3002_v61, 2 }
  0x91   : > { %v297_v5 = vmul.f32 %v3026_v58, %v2805_v40  ;;  %v902_v63 = vmul.f32 %v3033_v55, %v2925_v47  ;;  %v1569_v62 = vsel %vm417_vm0, %v1567_v51, %v1568_v24  ;;  %v451_v60 = vrot.slane %v341_v31, 1  ;;  %v3047_v40 = vld [vmem:[%s3973_s1 + $0x3] ss:$0 sm:$0xff] }
  0x92   : > { %v1347_v13 = vadd.f32 %v1255_v43, %v1102_v39  ;;  %v697_v11 = vrot.slane %v587_v22, 2  ;;  %v1944_v49 = vadd.f32 %v2526_v7, %v1905_v19  ;;  %v826_v34 = vmul.f32 %v3047_v40, %v2891_v4 }
  0x93   : > { %v1011_v32 = vrot.slane %v902_v63, 1  ;;  %v1147_v9 = vmul.f32 %v3054_v20, %v2925_v47  ;;  %v452_v0 = vsel %vm417_vm0, %v449_v16, %v451_v60  ;;  %v1461_v23 = vmul.f32 %v3063_v29, %v3042_v18 }
  0x94   : > { %v1416_v21 = vadd.f32 %v1384_v17, %v1347_v13  ;;  %v698_v2 = vsel %vm663_vm1, %v695_v45, %v697_v11  ;;  %1976 = vst [vmem:[%s2551_s10 + $0x58] sm:$0xff] %v1944_v49  ;;  %v1814_v8 = vsel %vm663_vm1, %v1812_v48, %v1813_v30  ;;  %v543_v15 = vadd.f32 %v452_v0, %v297_v5  ;;  %v3112_v13 = vld [vmem:[%s2393_s7 + $0xd8] sm:$0xff]  ;;  %v3116_v11 = vld [vmem:[%s2393_s7 + $0xe0] sm:$0xff] }
  0x95   : > { %v1256_v1 = vrot.slane %v1147_v9, 2  ;;  %v1706_v16 = vmul.f32 %v2452_v28, %v3042_v18  ;;  %v1012_v45 = vsel %vm417_vm0, %v1009_v3, %v1011_v32  ;;  %v1385_v25 = vmul.f32 %v3077_v27, %v2985_v41 }
  0x96   : > { %v1661_v56 = vadd.f32 %v1569_v62, %v1416_v21  ;;  %v342_v14 = vmul.f32 %v3011_v26, %v2887_v10  ;;  %v789_v35 = vadd.f32 %v698_v2, %v543_v15  ;;  %v1570_v52 = vrot.slane %v1461_v23, 1 }
  0x97   : > { %v298_v37 = vmul.f32 %v3026_v58, %v2887_v10  ;;  %v3087_v28 = vmul.f32 %v3011_v26, %v2891_v4  ;;  %v1257_v33 = vsel %vm663_vm1, %v1254_v50, %v1256_v1  ;;  %v588_v59 = vmul.f32 %v3018_v57, %v2887_v10 }
  0x98   : > { %v1906_v3 = vadd.f32 %v1814_v8, %v1661_v56  ;;  %v453_v44 = vrot.slane %v342_v14, 1  ;;  %v858_v6 = vadd.f32 %v826_v34, %v789_v35  ;;  %v1815_v46 = vrot.slane %v1706_v16, 2 }
  0x99   : > { %v454_v38 = vrot.slane %v3087_v28, 1  ;;  %v589_v42 = vmul.f32 %v3018_v57, %v2891_v4  ;;  %v699_v51 = vrot.slane %v588_v59, 2  ;;  %v827_v12 = vmul.f32 %v3047_v40, %v2980_v54 }
  0x9a   : > { %v1945_v53 = vadd.f32 %v2526_v7, %v1906_v3  ;;  %v903_v50 = vmul.f32 %v3033_v55, %v2980_v54  ;;  %v1103_v43 = vadd.f32 %v1012_v45, %v858_v6  ;;  %v904_v39 = vmul.f32 %v3033_v55, %v2985_v41 }
  0x9b   : > { %v455_v10 = vsel %vm417_vm0, %v453_v44, %v454_v38  ;;  %v700_v17 = vrot.slane %v589_v42, 2  ;;  %v1148_v22 = vmul.f32 %v3054_v20, %v2980_v54  ;;  %v1149_v19 = vmul.f32 %v3054_v20, %v2985_v41  ;;  %v3155_v42 = vld [vmem:[%s2393_s7 + $0xe8] sm:$0x3] }
  0x9c   : > { %1977 = vst [vmem:[%s2551_s10 + $0x60] sm:$0xff] %v1945_v53  ;;  %v544_v48 = vadd.f32 %v455_v10, %v298_v37  ;;  %v1013_v31 = vrot.slane %v903_v50, 1  ;;  %v1348_v5 = vadd.f32 %v1257_v33, %v1103_v43  ;;  %v1571_v63 = vsel %vm417_vm0, %v1568_v24, %v1570_v52  ;;  %v3128_v24 = vld [vmem:[%s3973_s1 + $0x8] ss:$0 sm:$0xff] }
  0x9d   : > { %v701_v62 = vsel %vm663_vm1, %v699_v51, %v700_v17  ;;  %v1014_v60 = vrot.slane %v904_v39, 1  ;;  %v1258_v34 = vrot.slane %v1148_v22, 2  ;;  %v1259_v32 = vrot.slane %v1149_v19, 2 }
  0x9e   : > { %v790_v49 = vadd.f32 %v701_v62, %v544_v48  ;;  %v1462_v9 = vmul.f32 %v3063_v29, %v3112_v13  ;;  %v1417_v21 = vadd.f32 %v1385_v25, %v1348_v5  ;;  %v3123_v36 = vmul.f32 %v3063_v29, %v3116_v11 }
  0x9f   : > { %v1015_v0 = vsel %vm417_vm0, %v1013_v31, %v1014_v60  ;;  %v1707_v2 = vmul.f32 %v3128_v24, %v3112_v13  ;;  %v1816_v23 = vsel %vm663_vm1, %v1813_v30, %v1815_v46  ;;  %v3137_v1 = vmul.f32 %v3128_v24, %v3116_v11 }
  0xa0   : > { %v859_v8 = vadd.f32 %v827_v12, %v790_v49  ;;  %v1572_v15 = vrot.slane %v1462_v9, 1  ;;  %v1662_v16 = vadd.f32 %v1571_v63, %v1417_v21  ;;  %v1260_v56 = vsel %vm663_vm1, %v1258_v34, %v1259_v32 }
  0xa1   : > { %v1386_v45 = vmul.f32 %v3077_v27, %v3112_v13  ;;  %v1573_v25 = vrot.slane %v3123_v36, 1  ;;  %v1817_v35 = vrot.slane %v1707_v2, 2  ;;  %v344_v61 = vmul.f32 %v3011_v26, %v2925_v47 }
  0xa2   : > { %v1104_v14 = vadd.f32 %v1015_v0, %v859_v8  ;;  %v590_v30 = vmul.f32 %v3018_v57, %v2925_v47  ;;  %v1907_v52 = vadd.f32 %v1816_v23, %v1662_v16  ;;  %v1818_v37 = vrot.slane %v3137_v1, 2  ;;  %v3191_v23 = vld [vmem:[%s3974_s2] ss:$0 sm:$0xff] }
  0xa3   : > { %v299_v28 = vmul.f32 %v3026_v58, %v2891_v4  ;;  %v905_v3 = vmul.f32 %v3033_v55, %v3042_v18  ;;  %v1574_v44 = vsel %vm417_vm0, %v1572_v15, %v1573_v25  ;;  %v456_v59 = vrot.slane %v344_v61, 1 }
  0xa4   : > { %v1349_v33 = vadd.f32 %v1260_v56, %v1104_v14  ;;  %v702_v6 = vrot.slane %v590_v30, 2  ;;  %v1946_v46 = vadd.f32 %v2526_v7, %v1907_v52  ;;  %v828_v47 = vmul.f32 %v3047_v40, %v2985_v41 }
  0xa5   : > { %v1016_v53 = vrot.slane %v905_v3, 1  ;;  %v1150_v51 = vmul.f32 %v3054_v20, %v3042_v18  ;;  %v457_v12 = vsel %vm417_vm0, %v454_v38, %v456_v59  ;;  %v1464_v43 = vmul.f32 %v3063_v29, %v3155_v42 }
  0xa6   : > { %v1418_v4 = vadd.f32 %v1386_v45, %v1349_v33  ;;  %v703_v50 = vsel %vm663_vm1, %v700_v17, %v702_v6  ;;  %1978 = vst [vmem:[%s2551_s10 + $0x68] sm:$0xff] %v1946_v46  ;;  %v1819_v7 = vsel %vm663_vm1, %v1817_v35, %v1818_v37  ;;  %v545_v10 = vadd.f32 %v457_v12, %v299_v28  ;;  %v3208_v33 = vld [vmem:[%s2393_s7 + $0xf0] sm:$0xff]  ;;  %v3212_v6 = vld [vmem:[%s2393_s7 + $0xf8] sm:$0xff] }
  0xa7   : > { %v1261_v39 = vrot.slane %v1150_v51, 2  ;;  %v1709_v48 = vmul.f32 %v3128_v24, %v3155_v42  ;;  %v1017_v22 = vsel %vm417_vm0, %v1014_v60, %v1016_v53  ;;  %v1387_v38 = vmul.f32 %v3077_v27, %v3116_v11 }
  0xa8   : > { %v1663_v31 = vadd.f32 %v1574_v44, %v1418_v4  ;;  %v345_v17 = vmul.f32 %v3011_v26, %v2980_v54  ;;  %v791_v19 = vadd.f32 %v703_v50, %v545_v10  ;;  %v1575_v5 = vrot.slane %v1464_v43, 1 }
  0xa9   : > { %v300_v63 = vmul.f32 %v3026_v58, %v2980_v54  ;;  %v3180_v62 = vmul.f32 %v3011_v26, %v2985_v41  ;;  %v1262_v34 = vsel %vm663_vm1, %v1259_v32, %v1261_v39  ;;  %v591_v9 = vmul.f32 %v3018_v57, %v2980_v54 }
  0xaa   : > { %v1908_v49 = vadd.f32 %v1819_v7, %v1663_v31  ;;  %v458_v60 = vrot.slane %v345_v17, 1  ;;  %v860_v21 = vadd.f32 %v828_v47, %v791_v19  ;;  %v1820_v0 = vrot.slane %v1709_v48, 2 }
  0xab   : > { %v459_v36 = vrot.slane %v3180_v62, 1  ;;  %v592_v2 = vmul.f32 %v3018_v57, %v2985_v41  ;;  %v704_v8 = vrot.slane %v591_v9, 2  ;;  %v829_v15 = vmul.f32 %v3047_v40, %v3112_v13 }
  0xac   : > { %v1947_v32 = vadd.f32 %v3191_v23, %v1908_v49  ;;  %v906_v54 = vmul.f32 %v3033_v55, %v3112_v13  ;;  %v1105_v16 = vadd.f32 %v1017_v22, %v860_v21  ;;  %v907_v14 = vmul.f32 %v3033_v55, %v3116_v11 }
  0xad   : > { %v460_v56 = vsel %vm417_vm0, %v458_v60, %v459_v36  ;;  %v705_v45 = vrot.slane %v592_v2, 2  ;;  %v1151_v30 = vmul.f32 %v3054_v20, %v3112_v13  ;;  %v1152_v52 = vmul.f32 %v3054_v20, %v3116_v11  ;;  %v3246_v2 = vld [vmem:[%s2393_s7 + $0x100] sm:$0x3] }
  0xae   : > { %1979 = vst [vmem:[%s2551_s10 + $0x70] sm:$0xff] %v1947_v32  ;;  %v546_v35 = vadd.f32 %v460_v56, %v300_v63  ;;  %v1018_v61 = vrot.slane %v906_v54, 1  ;;  %v1350_v28 = vadd.f32 %v1262_v34, %v1105_v16  ;;  %v1576_v3 = vsel %vm417_vm0, %v1573_v25, %v1575_v5 }
  0xaf   : > { %v706_v44 = vsel %vm663_vm1, %v704_v8, %v705_v45  ;;  %v1019_v59 = vrot.slane %v907_v14, 1  ;;  %v1263_v47 = vrot.slane %v1151_v30, 2  ;;  %v1264_v53 = vrot.slane %v1152_v52, 2 }
  0xb0   : > { %v792_v46 = vadd.f32 %v706_v44, %v546_v35  ;;  %v1465_v51 = vmul.f32 %v3063_v29, %v3208_v33  ;;  %v1419_v4 = vadd.f32 %v1387_v38, %v1350_v28  ;;  %v3219_v50 = vmul.f32 %v3063_v29, %v3212_v6 }
  0xb1   : > { %v1020_v12 = vsel %vm417_vm0, %v1018_v61, %v1019_v59  ;;  %v1710_v25 = vmul.f32 %v3128_v24, %v3208_v33  ;;  %v1821_v43 = vsel %vm663_vm1, %v1818_v37, %v1820_v0  ;;  %v3228_v39 = vmul.f32 %v3128_v24, %v3212_v6 }
  0xb2   : > { %v861_v7 = vadd.f32 %v829_v15, %v792_v46  ;;  %v1577_v10 = vrot.slane %v1465_v51, 1  ;;  %v1664_v48 = vadd.f32 %v1576_v3, %v1419_v4  ;;  %v1265_v31 = vsel %vm663_vm1, %v1263_v47, %v1264_v53 }
  0xb3   : > { %v1388_v22 = vmul.f32 %v3077_v27, %v3208_v33  ;;  %v1578_v38 = vrot.slane %v3219_v50, 1  ;;  %v1822_v19 = vrot.slane %v1710_v25, 2  ;;  %v347_v1 = vmul.f32 %v3011_v26, %v3042_v18 }
  0xb4   : > { %v1106_v17 = vadd.f32 %v1020_v12, %v861_v7  ;;  %v593_v37 = vmul.f32 %v3018_v57, %v3042_v18  ;;  %v1909_v5 = vadd.f32 %v1821_v43, %v1664_v48  ;;  %v1823_v63 = vrot.slane %v3228_v39, 2 }
  0xb5   : > { %v301_v62 = vmul.f32 %v3026_v58, %v2985_v41  ;;  %v908_v49 = vmul.f32 %v3033_v55, %v3155_v42  ;;  %v1579_v60 = vsel %vm417_vm0, %v1577_v10, %v1578_v38  ;;  %v461_v9 = vrot.slane %v347_v1, 1 }
  0xb6   : > { %v1351_v34 = vadd.f32 %v1265_v31, %v1106_v17  ;;  %v707_v21 = vrot.slane %v593_v37, 2  ;;  %v1948_v0 = vadd.f32 %v3191_v23, %v1909_v5  ;;  %v830_v18 = vmul.f32 %v3047_v40, %v3116_v11 }
  0xb7   : > { %v1021_v32 = vrot.slane %v908_v49, 1  ;;  %v1153_v8 = vmul.f32 %v3054_v20, %v3155_v42  ;;  %v462_v15 = vsel %vm417_vm0, %v459_v36, %v461_v9  ;;  %v1467_v16 = vmul.f32 %v3063_v29, %v3246_v2 }
  0xb8   : > { %v1420_v41 = vadd.f32 %v1388_v22, %v1351_v34  ;;  %v708_v54 = vsel %vm663_vm1, %v705_v45, %v707_v21  ;;  %1980 = vst [vmem:[%s2551_s10 + $0x78] sm:$0xff] %v1948_v0  ;;  %v1824_v56 = vsel %vm663_vm1, %v1822_v19, %v1823_v63  ;;  %v547_v14 = vadd.f32 %v462_v15, %v301_v62  ;;  %v3294_v34 = vld [vmem:[%s2393_s7 + $0x108] sm:$0xff]  ;;  %v3298_v21 = vld [vmem:[%s2393_s7 + $0x110] sm:$0xff] }
  0xb9   : > { %v1266_v35 = vrot.slane %v1153_v8, 2  ;;  %v1712_v61 = vmul.f32 %v3128_v24, %v3246_v2  ;;  %v1022_v52 = vsel %vm417_vm0, %v1019_v59, %v1021_v32  ;;  %v1389_v36 = vmul.f32 %v3077_v27, %v3212_v6 }
  0xba   : > { %v1665_v30 = vadd.f32 %v1579_v60, %v1420_v41  ;;  %v348_v45 = vmul.f32 %v3011_v26, %v3112_v13  ;;  %v793_v28 = vadd.f32 %v708_v54, %v547_v14  ;;  %v1580_v3 = vrot.slane %v1467_v16, 1 }
  0xbb   : > { %v302_v44 = vmul.f32 %v3026_v58, %v3112_v13  ;;  %v3271_v46 = vmul.f32 %v3011_v26, %v3116_v11  ;;  %v1267_v51 = vsel %vm663_vm1, %v1264_v53, %v1266_v35  ;;  %v594_v4 = vmul.f32 %v3018_v57, %v3112_v13 }
  0xbc   : > { %v1910_v47 = vadd.f32 %v1824_v56, %v1665_v30  ;;  %v463_v59 = vrot.slane %v348_v45, 1  ;;  %v862_v12 = vadd.f32 %v830_v18, %v793_v28  ;;  %v1825_v50 = vrot.slane %v1712_v61, 2 }
  0xbd   : > { %v464_v25 = vrot.slane %v3271_v46, 1  ;;  %v595_v43 = vmul.f32 %v3018_v57, %v3116_v11  ;;  %v709_v10 = vrot.slane %v594_v4, 2  ;;  %v831_v48 = vmul.f32 %v3047_v40, %v3208_v33 }
  0xbe   : > { %v1949_v7 = vadd.f32 %v3191_v23, %v1910_v47  ;;  %v909_v53 = vmul.f32 %v3033_v55, %v3208_v33  ;;  %v1107_v31 = vadd.f32 %v1022_v52, %v862_v12  ;;  %v910_v17 = vmul.f32 %v3033_v55, %v3212_v6 }
  0xbf   : > { %v465_v13 = vsel %vm417_vm0, %v463_v59, %v464_v25  ;;  %v710_v22 = vrot.slane %v595_v43, 2  ;;  %v1154_v37 = vmul.f32 %v3054_v20, %v3208_v33  ;;  %v1155_v5 = vmul.f32 %v3054_v20, %v3212_v6  ;;  %v3332_v43 = vld [vmem:[%s2393_s7 + $0x118] sm:$0x3] }
  0xc0   : > { %1981 = vst [vmem:[%s2551_s10 + $0x80] sm:$0xff] %v1949_v7  ;;  %v548_v19 = vadd.f32 %v465_v13, %v302_v44  ;;  %v1023_v1 = vrot.slane %v909_v53, 1  ;;  %v1352_v62 = vadd.f32 %v1267_v51, %v1107_v31  ;;  %v1581_v49 = vsel %vm417_vm0, %v1578_v38, %v1580_v3 }
  0xc1   : > { %v711_v60 = vsel %vm663_vm1, %v709_v10, %v710_v22  ;;  %v1024_v9 = vrot.slane %v910_v17, 1  ;;  %v1268_v18 = vrot.slane %v1154_v37, 2  ;;  %v1269_v32 = vrot.slane %v1155_v5, 2 }
  0xc2   : > { %v794_v0 = vadd.f32 %v711_v60, %v548_v19  ;;  %v1468_v8 = vmul.f32 %v3063_v29, %v3294_v34  ;;  %v1421_v41 = vadd.f32 %v1389_v36, %v1352_v62  ;;  %v3305_v54 = vmul.f32 %v3063_v29, %v3298_v21 }
  0xc3   : > { %v1025_v15 = vsel %vm417_vm0, %v1023_v1, %v1024_v9  ;;  %v1713_v38 = vmul.f32 %v3128_v24, %v3294_v34  ;;  %v1826_v16 = vsel %vm663_vm1, %v1823_v63, %v1825_v50  ;;  %v3314_v35 = vmul.f32 %v3128_v24, %v3298_v21 }
  0xc4   : > { %v863_v56 = vadd.f32 %v831_v48, %v794_v0  ;;  %v1582_v14 = vrot.slane %v1468_v8, 1  ;;  %v1666_v61 = vadd.f32 %v1581_v49, %v1421_v41  ;;  %v1270_v30 = vsel %vm663_vm1, %v1268_v18, %v1269_v32 }
  0xc5   : > { %v1390_v52 = vmul.f32 %v3077_v27, %v3294_v34  ;;  %v1583_v36 = vrot.slane %v3305_v54, 1  ;;  %v1827_v28 = vrot.slane %v1713_v38, 2  ;;  %v350_v39 = vmul.f32 %v3011_v26, %v3155_v42 }
  0xc6   : > { %v1108_v45 = vadd.f32 %v1025_v15, %v863_v56  ;;  %v596_v63 = vmul.f32 %v3018_v57, %v3155_v42  ;;  %v1911_v3 = vadd.f32 %v1826_v16, %v1666_v61  ;;  %v1828_v44 = vrot.slane %v3314_v35, 2 }
  0xc7   : > { %v303_v46 = vmul.f32 %v3026_v58, %v3116_v11  ;;  %v911_v47 = vmul.f32 %v3033_v55, %v3246_v2  ;;  %v1584_v59 = vsel %vm417_vm0, %v1582_v14, %v1583_v36  ;;  %v466_v4 = vrot.slane %v350_v39, 1 }
  0xc8   : > { %v1353_v51 = vadd.f32 %v1270_v30, %v1108_v45  ;;  %v712_v12 = vrot.slane %v596_v63, 2  ;;  %v1950_v50 = vadd.f32 %v3191_v23, %v1911_v3  ;;  %v832_v42 = vmul.f32 %v3047_v40, %v3212_v6 }
  0xc9   : > { %v1026_v7 = vrot.slane %v911_v47, 1  ;;  %v1156_v10 = vmul.f32 %v3054_v20, %v3246_v2  ;;  %v467_v48 = vsel %vm417_vm0, %v464_v25, %v466_v4  ;;  %v1470_v31 = vmul.f32 %v3063_v29, %v3332_v43 }
  0xca   : > { %v1422_v11 = vadd.f32 %v1390_v52, %v1353_v51  ;;  %v713_v53 = vsel %vm663_vm1, %v710_v22, %v712_v12  ;;  %1982 = vst [vmem:[%s2551_s10 + $0x88] sm:$0xff] %v1950_v50  ;;  %v1829_v13 = vsel %vm663_vm1, %v1827_v28, %v1828_v44  ;;  %v549_v17 = vadd.f32 %v467_v48, %v303_v46  ;;  %v3380_v51 = vld [vmem:[%s2393_s7 + $0x120] sm:$0xff]  ;;  %v3384_v12 = vld [vmem:[%s2393_s7 + $0x128] sm:$0xff] }
  0xcb   : > { %v1271_v19 = vrot.slane %v1156_v10, 2  ;;  %v1715_v1 = vmul.f32 %v3128_v24, %v3332_v43  ;;  %v1027_v5 = vsel %vm417_vm0, %v1024_v9, %v1026_v7  ;;  %v1391_v25 = vmul.f32 %v3077_v27, %v3298_v21 }
  0xcc   : > { %v1667_v37 = vadd.f32 %v1584_v59, %v1422_v11  ;;  %v351_v22 = vmul.f32 %v3011_v26, %v3208_v33  ;;  %v795_v62 = vadd.f32 %v713_v53, %v549_v17  ;;  %v1585_v49 = vrot.slane %v1470_v31, 1 }
  0xcd   : > { %v304_v60 = vmul.f32 %v3026_v58, %v3208_v33  ;;  %v3357_v0 = vmul.f32 %v3011_v26, %v3212_v6  ;;  %v1272_v8 = vsel %vm663_vm1, %v1269_v32, %v1271_v19  ;;  %v597_v41 = vmul.f32 %v3018_v57, %v3208_v33 }
  0xce   : > { %v1912_v18 = vadd.f32 %v1829_v13, %v1667_v37  ;;  %v468_v9 = vrot.slane %v351_v22, 1  ;;  %v864_v15 = vadd.f32 %v832_v42, %v795_v62  ;;  %v1830_v54 = vrot.slane %v1715_v1, 2 }
  0xcf   : > { %v469_v38 = vrot.slane %v3357_v0, 1  ;;  %v598_v16 = vmul.f32 %v3018_v57, %v3212_v6  ;;  %v714_v14 = vrot.slane %v597_v41, 2  ;;  %v833_v61 = vmul.f32 %v3047_v40, %v3294_v34 }
  0xd0   : > { %v1951_v56 = vadd.f32 %v3191_v23, %v1912_v18  ;;  %v912_v32 = vmul.f32 %v3033_v55, %v3294_v34  ;;  %v1109_v30 = vadd.f32 %v1027_v5, %v864_v15  ;;  %v913_v45 = vmul.f32 %v3033_v55, %v3298_v21 }
  0xd1   : > { %v470_v33 = vsel %vm417_vm0, %v468_v9, %v469_v38  ;;  %v715_v52 = vrot.slane %v598_v16, 2  ;;  %v1157_v63 = vmul.f32 %v3054_v20, %v3294_v34  ;;  %v1158_v3 = vmul.f32 %v3054_v20, %v3298_v21  ;;  %v3418_v16 = vld [vmem:[%s2393_s7 + $0x130] sm:$0x3] }
  0xd2   : > { %1983 = vst [vmem:[%s2551_s10 + $0x90] sm:$0xff] %v1951_v56  ;;  %v550_v28 = vadd.f32 %v470_v33, %v304_v60  ;;  %v1028_v39 = vrot.slane %v912_v32, 1  ;;  %v1354_v46 = vadd.f32 %v1272_v8, %v1109_v30  ;;  %v1586_v47 = vsel %vm417_vm0, %v1583_v36, %v1585_v49 }
  0xd3   : > { %v716_v59 = vsel %vm663_vm1, %v714_v14, %v715_v52  ;;  %v1029_v4 = vrot.slane %v913_v45, 1  ;;  %v1273_v42 = vrot.slane %v1157_v63, 2  ;;  %v1274_v7 = vrot.slane %v1158_v3, 2 }
  0xd4   : > { %v796_v50 = vadd.f32 %v716_v59, %v550_v28  ;;  %v1471_v10 = vmul.f32 %v3063_v29, %v3380_v51  ;;  %v1423_v11 = vadd.f32 %v1391_v25, %v1354_v46  ;;  %v3391_v53 = vmul.f32 %v3063_v29, %v3384_v12 }
  0xd5   : > { %v1030_v48 = vsel %vm417_vm0, %v1028_v39, %v1029_v4  ;;  %v1716_v36 = vmul.f32 %v3128_v24, %v3380_v51  ;;  %v1831_v31 = vsel %vm663_vm1, %v1828_v44, %v1830_v54  ;;  %v3400_v19 = vmul.f32 %v3128_v24, %v3384_v12 }
  0xd6   : > { %v865_v13 = vadd.f32 %v833_v61, %v796_v50  ;;  %v1587_v17 = vrot.slane %v1471_v10, 1  ;;  %v1668_v1 = vadd.f32 %v1586_v47, %v1423_v11  ;;  %v1275_v37 = vsel %vm663_vm1, %v1273_v42, %v1274_v7 }
  0xd7   : > { %v1392_v5 = vmul.f32 %v3077_v27, %v3380_v51  ;;  %v1588_v25 = vrot.slane %v3391_v53, 1  ;;  %v1832_v62 = vrot.slane %v1716_v36, 2  ;;  %v353_v35 = vmul.f32 %v3011_v26, %v3246_v2 }
  0xd8   : > { %v1110_v22 = vadd.f32 %v1030_v48, %v865_v13  ;;  %v599_v44 = vmul.f32 %v3018_v57, %v3246_v2  ;;  %v1913_v49 = vadd.f32 %v1831_v31, %v1668_v1  ;;  %v1833_v60 = vrot.slane %v3400_v19, 2 }
  0xd9   : > { %v305_v0 = vmul.f32 %v3026_v58, %v3212_v6  ;;  %v914_v18 = vmul.f32 %v3033_v55, %v3332_v43  ;;  %v1589_v9 = vsel %vm417_vm0, %v1587_v17, %v1588_v25  ;;  %v471_v41 = vrot.slane %v353_v35, 1 }
  0xda   : > { %v1355_v8 = vadd.f32 %v1275_v37, %v1110_v22  ;;  %v717_v15 = vrot.slane %v599_v44, 2  ;;  %v1952_v54 = vadd.f32 %v3191_v23, %v1913_v49  ;;  %v834_v2 = vmul.f32 %v3047_v40, %v3298_v21 }
  0xdb   : > { %v1031_v56 = vrot.slane %v914_v18, 1  ;;  %v1159_v14 = vmul.f32 %v3054_v20, %v3332_v43  ;;  %v472_v61 = vsel %vm417_vm0, %v469_v38, %v471_v41  ;;  %v1473_v30 = vmul.f32 %v3063_v29, %v3418_v16 }
  0xdc   : > { %v1424_v6 = vadd.f32 %v1392_v5, %v1355_v8  ;;  %v718_v32 = vsel %vm663_vm1, %v715_v52, %v717_v15  ;;  %1984 = vst [vmem:[%s2551_s10 + $0x98] sm:$0xff] %v1952_v54  ;;  %v1834_v33 = vsel %vm663_vm1, %v1832_v62, %v1833_v60  ;;  %v551_v45 = vadd.f32 %v472_v61, %v305_v0  ;;  %v3466_v8 = vld [vmem:[%s2393_s7 + $0x138] sm:$0xff]  ;;  %v3470_v15 = vld [vmem:[%s2393_s7 + $0x140] sm:$0xff] }
  0xdd   : > { %v1276_v28 = vrot.slane %v1159_v14, 2  ;;  %v1718_v39 = vmul.f32 %v3128_v24, %v3418_v16  ;;  %v1032_v3 = vsel %vm417_vm0, %v1029_v4, %v1031_v56  ;;  %v1393_v38 = vmul.f32 %v3077_v27, %v3384_v12 }
  0xde   : > { %v1669_v63 = vadd.f32 %v1589_v9, %v1424_v6  ;;  %v354_v52 = vmul.f32 %v3011_v26, %v3294_v34  ;;  %v797_v46 = vadd.f32 %v718_v32, %v551_v45  ;;  %v1590_v47 = vrot.slane %v1473_v30, 1 }
  0xdf   : > { %v306_v59 = vmul.f32 %v3026_v58, %v3294_v34  ;;  %v3443_v50 = vmul.f32 %v3011_v26, %v3298_v21  ;;  %v1277_v10 = vsel %vm663_vm1, %v1274_v7, %v1276_v28  ;;  %v600_v11 = vmul.f32 %v3018_v57, %v3294_v34 }
  0xe0   : > { %v1914_v42 = vadd.f32 %v1834_v33, %v1669_v63  ;;  %v473_v4 = vrot.slane %v354_v52, 1  ;;  %v866_v48 = vadd.f32 %v834_v2, %v797_v46  ;;  %v1835_v53 = vrot.slane %v1718_v39, 2 }
  0xe1   : > { %v474_v36 = vrot.slane %v3443_v50, 1  ;;  %v601_v31 = vmul.f32 %v3018_v57, %v3298_v21  ;;  %v719_v17 = vrot.slane %v600_v11, 2  ;;  %v835_v1 = vmul.f32 %v3047_v40, %v3380_v51 }
  0xe2   : > { %v1953_v13 = vadd.f32 %v3191_v23, %v1914_v42  ;;  %v915_v7 = vmul.f32 %v3033_v55, %v3380_v51  ;;  %v1111_v37 = vadd.f32 %v1032_v3, %v866_v48  ;;  %v916_v22 = vmul.f32 %v3033_v55, %v3384_v12 }
  0xe3   : > { %v475_v34 = vsel %vm417_vm0, %v473_v4, %v474_v36  ;;  %v720_v5 = vrot.slane %v601_v31, 2  ;;  %v1160_v44 = vmul.f32 %v3054_v20, %v3380_v51  ;;  %v1161_v49 = vmul.f32 %v3054_v20, %v3384_v12  ;;  %v3504_v31 = vld [vmem:[%s2393_s7 + $0x148] sm:$0x3] }
  0xe4   : > { %1985 = vst [vmem:[%s2551_s10 + $0xa0] sm:$0xff] %v1953_v13  ;;  %v552_v62 = vadd.f32 %v475_v34, %v306_v59  ;;  %v1033_v35 = vrot.slane %v915_v7, 1  ;;  %v1356_v0 = vadd.f32 %v1277_v10, %v1111_v37  ;;  %v1591_v18 = vsel %vm417_vm0, %v1588_v25, %v1590_v47 }
  0xe5   : > { %v721_v9 = vsel %vm663_vm1, %v719_v17, %v720_v5  ;;  %v1034_v41 = vrot.slane %v916_v22, 1  ;;  %v1278_v2 = vrot.slane %v1160_v44, 2  ;;  %v1279_v56 = vrot.slane %v1161_v49, 2 }
  0xe6   : > { %v798_v54 = vadd.f32 %v721_v9, %v552_v62  ;;  %v1474_v14 = vmul.f32 %v3063_v29, %v3466_v8  ;;  %v1425_v6 = vadd.f32 %v1393_v38, %v1356_v0  ;;  %v3477_v32 = vmul.f32 %v3063_v29, %v3470_v15 }
  0xe7   : > { %v1035_v61 = vsel %vm417_vm0, %v1033_v35, %v1034_v41  ;;  %v1719_v25 = vmul.f32 %v3128_v24, %v3466_v8  ;;  %v1836_v30 = vsel %vm663_vm1, %v1833_v60, %v1835_v53  ;;  %v3486_v28 = vmul.f32 %v3128_v24, %v3470_v15 }
  0xe8   : > { %v867_v33 = vadd.f32 %v835_v1, %v798_v54  ;;  %v1592_v45 = vrot.slane %v1474_v14, 1  ;;  %v1670_v39 = vadd.f32 %v1591_v18, %v1425_v6  ;;  %v1280_v63 = vsel %vm663_vm1, %v1278_v2, %v1279_v56 }
  0xe9   : > { %v1394_v3 = vmul.f32 %v3077_v27, %v3466_v8  ;;  %v1593_v38 = vrot.slane %v3477_v32, 1  ;;  %v1837_v46 = vrot.slane %v1719_v25, 2  ;;  %v356_v19 = vmul.f32 %v3011_v26, %v3332_v43 }
  0xea   : > { %v1112_v52 = vadd.f32 %v1035_v61, %v867_v33  ;;  %v602_v60 = vmul.f32 %v3018_v57, %v3332_v43  ;;  %v1915_v47 = vadd.f32 %v1836_v30, %v1670_v39  ;;  %v1838_v59 = vrot.slane %v3486_v28, 2 }
  0xeb   : > { %v307_v50 = vmul.f32 %v3026_v58, %v3298_v21  ;;  %v917_v42 = vmul.f32 %v3033_v55, %v3418_v16  ;;  %v1594_v4 = vsel %vm417_vm0, %v1592_v45, %v1593_v38  ;;  %v476_v11 = vrot.slane %v356_v19, 1 }
  0xec   : > { %v1357_v10 = vadd.f32 %v1280_v63, %v1112_v52  ;;  %v722_v48 = vrot.slane %v602_v60, 2  ;;  %v1954_v53 = vadd.f32 %v3191_v23, %v1915_v47  ;;  %v836_v43 = vmul.f32 %v3047_v40, %v3384_v12 }
  0xed   : > { %v1036_v13 = vrot.slane %v917_v42, 1  ;;  %v1162_v17 = vmul.f32 %v3054_v20, %v3418_v16  ;;  %v477_v1 = vsel %vm417_vm0, %v474_v36, %v476_v11  ;;  %v1476_v37 = vmul.f32 %v3063_v29, %v3504_v31 }
  0xee   : > { %v1426_v21 = vadd.f32 %v1394_v3, %v1357_v10  ;;  %v723_v7 = vsel %vm663_vm1, %v720_v5, %v722_v48  ;;  %1986 = vst [vmem:[%s2551_s10 + $0xa8] sm:$0xff] %v1954_v53  ;;  %v1839_v34 = vsel %vm663_vm1, %v1837_v46, %v1838_v59  ;;  %v553_v22 = vadd.f32 %v477_v1, %v307_v50  ;;  %v3552_v10 = vld [vmem:[%s2393_s7 + $0x150] sm:$0xff]  ;;  %v3556_v48 = vld [vmem:[%s2393_s7 + $0x158] sm:$0xff] }
  0xef   : > { %v1281_v62 = vrot.slane %v1162_v17, 2  ;;  %v1721_v35 = vmul.f32 %v3128_v24, %v3504_v31  ;;  %v1037_v49 = vsel %vm417_vm0, %v1034_v41, %v1036_v13  ;;  %v1395_v36 = vmul.f32 %v3077_v27, %v3470_v15 }
  0xf0   : > { %v1671_v44 = vadd.f32 %v1594_v4, %v1426_v21  ;;  %v357_v5 = vmul.f32 %v3011_v26, %v3380_v51  ;;  %v799_v0 = vadd.f32 %v723_v7, %v553_v22  ;;  %v1595_v18 = vrot.slane %v1476_v37, 1 }
  0xf1   : > { %v308_v9 = vmul.f32 %v3026_v58, %v3380_v51  ;;  %v3529_v54 = vmul.f32 %v3011_v26, %v3384_v12  ;;  %v1282_v14 = vsel %vm663_vm1, %v1279_v56, %v1281_v62  ;;  %v603_v6 = vmul.f32 %v3018_v57, %v3380_v51 }
  0xf2   : > { %v1916_v2 = vadd.f32 %v1839_v34, %v1671_v44  ;;  %v478_v41 = vrot.slane %v357_v5, 1  ;;  %v868_v61 = vadd.f32 %v836_v43, %v799_v0  ;;  %v1840_v32 = vrot.slane %v1721_v35, 2 }
  0xf3   : > { %v479_v25 = vrot.slane %v3529_v54, 1  ;;  %v604_v30 = vmul.f32 %v3018_v57, %v3384_v12  ;;  %v724_v45 = vrot.slane %v603_v6, 2  ;;  %v837_v39 = vmul.f32 %v3047_v40, %v3466_v8 }
  0xf4   : > { %v1955_v33 = vadd.f32 %v3191_v23, %v1916_v2  ;;  %v918_v56 = vmul.f32 %v3033_v55, %v3466_v8  ;;  %v1113_v63 = vadd.f32 %v1037_v49, %v868_v61  ;;  %v919_v52 = vmul.f32 %v3033_v55, %v3470_v15 }
  0xf5   : > { %v480_v51 = vsel %vm417_vm0, %v478_v41, %v479_v25  ;;  %v725_v3 = vrot.slane %v604_v30, 2  ;;  %v1163_v60 = vmul.f32 %v3054_v20, %v3466_v8  ;;  %v1164_v47 = vmul.f32 %v3054_v20, %v3470_v15  ;;  %v3590_v30 = vld [vmem:[%s2393_s7 + $0x160] sm:$0x3] }
  0xf6   : > { %1987 = vst [vmem:[%s2551_s10 + $0xb0] sm:$0xff] %v1955_v33  ;;  %v554_v46 = vadd.f32 %v480_v51, %v308_v9  ;;  %v1038_v19 = vrot.slane %v918_v56, 1  ;;  %v1358_v50 = vadd.f32 %v1282_v14, %v1113_v63  ;;  %v1596_v42 = vsel %vm417_vm0, %v1593_v38, %v1595_v18 }
  0xf7   : > { %v726_v4 = vsel %vm663_vm1, %v724_v45, %v725_v3  ;;  %v1039_v11 = vrot.slane %v919_v52, 1  ;;  %v1283_v43 = vrot.slane %v1163_v60, 2  ;;  %v1284_v13 = vrot.slane %v1164_v47, 2 }
  0xf8   : > { %v800_v53 = vadd.f32 %v726_v4, %v554_v46  ;;  %v1477_v17 = vmul.f32 %v3063_v29, %v3552_v10  ;;  %v1427_v21 = vadd.f32 %v1395_v36, %v1358_v50  ;;  %v3563_v7 = vmul.f32 %v3063_v29, %v3556_v48 }
  0xf9   : > { %v1040_v1 = vsel %vm417_vm0, %v1038_v19, %v1039_v11  ;;  %v1722_v38 = vmul.f32 %v3128_v24, %v3552_v10  ;;  %v1841_v37 = vsel %vm663_vm1, %v1838_v59, %v1840_v32  ;;  %v3572_v62 = vmul.f32 %v3128_v24, %v3556_v48 }
  0xfa   : > { %v869_v34 = vadd.f32 %v837_v39, %v800_v53  ;;  %v1597_v22 = vrot.slane %v1477_v17, 1  ;;  %v1672_v35 = vadd.f32 %v1596_v42, %v1427_v21  ;;  %v1285_v44 = vsel %vm663_vm1, %v1283_v43, %v1284_v13 }
  0xfb   : > { %v1396_v49 = vmul.f32 %v3077_v27, %v3552_v10  ;;  %v1598_v36 = vrot.slane %v3563_v7, 1  ;;  %v1842_v0 = vrot.slane %v1722_v38, 2  ;;  %v359_v28 = vmul.f32 %v3011_v26, %v3418_v16 }
  0xfc   : > { %v1114_v5 = vadd.f32 %v1040_v1, %v869_v34  ;;  %v605_v59 = vmul.f32 %v3018_v57, %v3418_v16  ;;  %v1917_v18 = vadd.f32 %v1841_v37, %v1672_v35  ;;  %v1843_v9 = vrot.slane %v3572_v62, 2  ;;  %v3676_v62 = vld [vmem:[%s3973_s1 + $0x1] ss:$0 sm:$0xff] }
  0xfd   : > { %v309_v54 = vmul.f32 %v3026_v58, %v3384_v12  ;;  %v920_v2 = vmul.f32 %v3033_v55, %v3504_v31  ;;  %v1599_v41 = vsel %vm417_vm0, %v1597_v22, %v1598_v36  ;;  %v481_v6 = vrot.slane %v359_v28, 1 }
  0xfe   : > { %v1359_v14 = vadd.f32 %v1285_v44, %v1114_v5  ;;  %v727_v61 = vrot.slane %v605_v59, 2  ;;  %v1956_v32 = vadd.f32 %v3191_v23, %v1917_v18  ;;  %v838_v16 = vmul.f32 %v3047_v40, %v3470_v15  ;;  %v3645_v59 = vld [vmem:[%s2393_s7 + $0x168] sm:$0xff] }
  0xff   : > { %v1041_v33 = vrot.slane %v920_v2, 1  ;;  %v1165_v45 = vmul.f32 %v3054_v20, %v3504_v31  ;;  %v482_v39 = vsel %vm417_vm0, %v479_v25, %v481_v6  ;;  %v1479_v63 = vmul.f32 %v3063_v29, %v3590_v30 }
 0x100   : > { %v1428_v12 = vadd.f32 %v1396_v49, %v1359_v14  ;;  %v728_v56 = vsel %vm663_vm1, %v725_v3, %v727_v61  ;;  %1988 = vst [vmem:[%s2551_s10 + $0xb8] sm:$0xff] %v1956_v32  ;;  %v1844_v51 = vsel %vm663_vm1, %v1842_v0, %v1843_v9  ;;  %v555_v52 = vadd.f32 %v482_v39, %v309_v54  ;;  %v3650_v54 = vld [vmem:[%s2393_s7 + $0x170] sm:$0xff] }
 0x101   : > { %v1286_v46 = vrot.slane %v1165_v45, 2  ;;  %v1724_v19 = vmul.f32 %v3128_v24, %v3590_v30  ;;  %v1042_v47 = vsel %vm417_vm0, %v1039_v11, %v1041_v33  ;;  %v1397_v25 = vmul.f32 %v3077_v27, %v3556_v48 }
 0x102   : > { %v1673_v60 = vadd.f32 %v1599_v41, %v1428_v12  ;;  %v360_v3 = vmul.f32 %v3011_v26, %v3466_v8  ;;  %v801_v50 = vadd.f32 %v728_v56, %v555_v52  ;;  %v1600_v42 = vrot.slane %v1479_v63, 1 }
 0x103   : > { %v310_v4 = vmul.f32 %v3026_v58, %v3466_v8  ;;  %v3615_v53 = vmul.f32 %v3011_v26, %v3470_v15  ;;  %v1287_v17 = vsel %vm663_vm1, %v1284_v13, %v1286_v46  ;;  %v606_v21 = vmul.f32 %v3018_v57, %v3466_v8  ;;  %v3683_v46 = vld [vmem:[%s3973_s1 + $0x2] ss:$0 sm:$0xff] }
 0x104   : > { %v1918_v43 = vadd.f32 %v1844_v51, %v1673_v60  ;;  %v483_v11 = vrot.slane %v360_v3, 1  ;;  %v870_v1 = vadd.f32 %v838_v16, %v801_v50  ;;  %v1845_v7 = vrot.slane %v1724_v19, 2  ;;  %v3698_v3 = vld [vmem:[%s3973_s1 + $0x4] ss:$0 sm:$0xff] }
 0x105   : > { %v484_v38 = vrot.slane %v3615_v53, 1  ;;  %v3623_v37 = vmul.f32 %v3018_v57, %v3470_v15  ;;  %v729_v58 = vrot.slane %v606_v21, 2  ;;  %v839_v34 = vmul.f32 %v3047_v40, %v3552_v10 }
 0x106   : > { %v1957_v26 = vadd.f32 %v3191_v23, %v1918_v43  ;;  %v921_v13 = vmul.f32 %v3033_v55, %v3552_v10  ;;  %v1115_v8 = vadd.f32 %v1042_v47, %v870_v1  ;;  %v3634_v57 = vmul.f32 %v3033_v55, %v3556_v48  ;;  %v3691_v47 = vld [vmem:[%s3973_s1] ss:$0 sm:$0xff]  ;;  %v3719_v1 = vld [vmem:[%s3973_s1 + $0x5] ss:$0 sm:$0xff] }
 0x107   : > { %v485_v22 = vsel %vm417_vm0, %v483_v11, %v484_v38  ;;  %v730_v35 = vrot.slane %v3623_v37, 2  ;;  %v1166_v5 = vmul.f32 %v3054_v20, %v3552_v10  ;;  %v3641_v40 = vmul.f32 %v3054_v20, %v3556_v48 }
 0x108   : > { %1989 = vst [vmem:[%s2551_s10 + $0xc0] sm:$0xff] %v1957_v26  ;;  %v556_v44 = vadd.f32 %v485_v22, %v310_v4  ;;  %v1043_v49 = vrot.slane %v921_v13, 1  ;;  %v1360_v0 = vadd.f32 %v1287_v17, %v1115_v8  ;;  %v1601_v28 = vsel %vm417_vm0, %v1598_v36, %v1600_v42  ;;  %v3707_v17 = vld [vmem:[%s2393_s7 + $0x178] sm:$0x3] }
 0x109   : > { %v731_v18 = vsel %vm663_vm1, %v729_v58, %v730_v35  ;;  %v1044_v55 = vrot.slane %v3634_v57, 1  ;;  %v1288_v14 = vrot.slane %v1166_v5, 2  ;;  %v1289_v41 = vrot.slane %v3641_v40, 2 }
 0x10a   : > { %v802_v2 = vadd.f32 %v731_v18, %v556_v44  ;;  %v1480_v6 = vmul.f32 %v3063_v29, %v3645_v59  ;;  %v1429_v20 = vadd.f32 %v1397_v25, %v1360_v0  ;;  %v3658_v36 = vmul.f32 %v3063_v29, %v3650_v54 }
 0x10b   : > { %v1045_v61 = vsel %vm417_vm0, %v1043_v49, %v1044_v55  ;;  %v1725_v32 = vmul.f32 %v3128_v24, %v3645_v59  ;;  %v1846_v16 = vsel %vm663_vm1, %v1843_v9, %v1845_v7  ;;  %v3667_v12 = vmul.f32 %v3128_v24, %v3650_v54  ;;  %v3742_v49 = vld [vmem:[%s3973_s1 + $0x6] ss:$0 sm:$0xff] }
 0x10c   : > { %v871_v33 = vadd.f32 %v839_v34, %v802_v2  ;;  %v1602_v45 = vrot.slane %v1480_v6, 1  ;;  %v1674_v39 = vadd.f32 %v1601_v28, %v1429_v20  ;;  %v1290_v56 = vsel %vm663_vm1, %v1288_v14, %v1289_v41  ;;  %v3728_v34 = vld [vmem:[%s3973_s1 + $0x7] ss:$0 sm:$0xff] }
 0x10d   : > { %v1398_v29 = vmul.f32 %v3077_v27, %v3645_v59  ;;  %v1603_v63 = vrot.slane %v3658_v36, 1  ;;  %v1847_v52 = vrot.slane %v1725_v32, 2  ;;  %v362_v9 = vmul.f32 %v3676_v62, %v3504_v31 }
 0x10e   : > { %v1116_v51 = vadd.f32 %v1045_v61, %v871_v33  ;;  %v608_v27 = vmul.f32 %v3683_v46, %v3504_v31  ;;  %v1919_v19 = vadd.f32 %v1846_v16, %v1674_v39  ;;  %v1848_v60 = vrot.slane %v3667_v12, 2 }
 0x10f   : > { %v311_v25 = vmul.f32 %v3691_v47, %v3470_v15  ;;  %v923_v50 = vmul.f32 %v3698_v3, %v3590_v30  ;;  %v1604_v42 = vsel %vm417_vm0, %v1602_v45, %v1603_v63  ;;  %v486_v4 = vrot.slane %v362_v9, 1  ;;  %v3712_v15 = vld [vmem:[%s3973_s1 + $0x3] ss:$0 sm:$0xff] }
 0x110   : > { %v1361_v31 = vadd.f32 %v1290_v56, %v1116_v51  ;;  %v732_v53 = vrot.slane %v608_v27, 2  ;;  %v1958_v43 = vadd.f32 %v3191_v23, %v1919_v19  ;;  %v840_v11 = vmul.f32 %v3712_v15, %v3556_v48 }
 0x111   : > { %v1046_v21 = vrot.slane %v923_v50, 1  ;;  %v1168_v7 = vmul.f32 %v3719_v1, %v3590_v30  ;;  %v487_v26 = vsel %vm417_vm0, %v484_v38, %v486_v4  ;;  %v1482_v13 = vmul.f32 %v3728_v34, %v3707_v17 }
 0x112   : > { %v1430_v37 = vadd.f32 %v1398_v29, %v1361_v31  ;;  %v733_v58 = vsel %vm663_vm1, %v730_v35, %v732_v53  ;;  %1990 = vst [vmem:[%s2551_s10 + $0xc8] sm:$0xff] %v1958_v43  ;;  %v1849_v8 = vsel %vm663_vm1, %v1847_v52, %v1848_v60  ;;  %v557_v22 = vadd.f32 %v487_v26, %v311_v25  ;;  %v3777_v31 = vld [vmem:[%s2393_s7 + $0x180] sm:$0xff]  ;;  %v3781_v53 = vld [vmem:[%s2393_s7 + $0x188] sm:$0xff] }
 0x113   : > { %v1291_v57 = vrot.slane %v1168_v7, 2  ;;  %v1727_v38 = vmul.f32 %v3128_v24, %v3707_v17  ;;  %v1047_v35 = vsel %vm417_vm0, %v1044_v55, %v1046_v21  ;;  %v1399_v5 = vmul.f32 %v3742_v49, %v3650_v54 }
 0x114   : > { %v1675_v44 = vadd.f32 %v1604_v42, %v1430_v37  ;;  %v363_v40 = vmul.f32 %v3676_v62, %v3552_v10  ;;  %v803_v0 = vadd.f32 %v733_v58, %v557_v22  ;;  %v1605_v28 = vrot.slane %v1482_v13, 1 }
 0x115   : > { %v312_v18 = vmul.f32 %v3691_v47, %v3552_v10  ;;  %v3752_v24 = vmul.f32 %v3676_v62, %v3556_v48  ;;  %v1292_v2 = vsel %vm663_vm1, %v1289_v41, %v1291_v57  ;;  %v609_v6 = vmul.f32 %v3683_v46, %v3552_v10 }
 0x116   : > { %v1920_v55 = vadd.f32 %v1849_v8, %v1675_v44  ;;  %v488_v14 = vrot.slane %v363_v40, 1  ;;  %v872_v20 = vadd.f32 %v840_v11, %v803_v0  ;;  %v1850_v61 = vrot.slane %v1727_v38, 2 }
 0x117   : > { %v489_v32 = vrot.slane %v3752_v24, 1  ;;  %v610_v16 = vmul.f32 %v3683_v46, %v3556_v48  ;;  %v734_v45 = vrot.slane %v609_v6, 2  ;;  %v841_v39 = vmul.f32 %v3712_v15, %v3645_v59 }
 0x118   : > { %v1959_v33 = vadd.f32 %v3191_v23, %v1920_v55  ;;  %v924_v41 = vmul.f32 %v3698_v3, %v3645_v59  ;;  %v1117_v56 = vadd.f32 %v1047_v35, %v872_v20  ;;  %v925_v51 = vmul.f32 %v3698_v3, %v3650_v54 }
 0x119   : > { %v490_v10 = vsel %vm417_vm0, %v488_v14, %v489_v32  ;;  %v735_v29 = vrot.slane %v610_v16, 2  ;;  %v1169_v27 = vmul.f32 %v3719_v1, %v3645_v59  ;;  %v1170_v19 = vmul.f32 %v3719_v1, %v3650_v54  ;;  %v3820_v16 = vld [vmem:[%s2393_s7 + $0x190] sm:$0x3] }
 0x11a   : > { %1991 = vst [vmem:[%s2551_s10 + $0xd0] sm:$0xff] %v1959_v33  ;;  %v558_v52 = vadd.f32 %v490_v10, %v312_v18  ;;  %v1048_v9 = vrot.slane %v924_v41, 1  ;;  %v1362_v25 = vadd.f32 %v1292_v2, %v1117_v56  ;;  %v1606_v50 = vsel %vm417_vm0, %v1603_v63, %v1605_v28  ;;  %v3793_v63 = vld [vmem:[%s3973_s1 + $0x8] ss:$0 sm:$0xff] }
 0x11b   : > { %v736_v42 = vsel %vm663_vm1, %v734_v45, %v735_v29  ;;  %v1049_v4 = vrot.slane %v925_v51, 1  ;;  %v1293_v11 = vrot.slane %v1169_v27, 2  ;;  %v1294_v21 = vrot.slane %v1170_v19, 2 }
 0x11c   : > { %v804_v43 = vadd.f32 %v736_v42, %v558_v52  ;;  %v1483_v7 = vmul.f32 %v3728_v34, %v3777_v31  ;;  %v1431_v37 = vadd.f32 %v1399_v5, %v1362_v25  ;;  %v3788_v36 = vmul.f32 %v3728_v34, %v3781_v53 }
 0x11d   : > { %v1050_v26 = vsel %vm417_vm0, %v1048_v9, %v1049_v4  ;;  %v1728_v58 = vmul.f32 %v3793_v63, %v3777_v31  ;;  %v1851_v13 = vsel %vm663_vm1, %v1848_v60, %v1850_v61  ;;  %v3802_v57 = vmul.f32 %v3793_v63, %v3781_v53 }
 0x11e   : > { %v873_v8 = vadd.f32 %v841_v39, %v804_v43  ;;  %v1607_v22 = vrot.slane %v1483_v7, 1  ;;  %v1676_v38 = vadd.f32 %v1606_v50, %v1431_v37  ;;  %v1295_v44 = vsel %vm663_vm1, %v1293_v11, %v1294_v21 }
 0x11f   : > { %v1400_v35 = vmul.f32 %v3742_v49, %v3777_v31  ;;  %v1608_v5 = vrot.slane %v3788_v36, 1  ;;  %v1852_v0 = vrot.slane %v1728_v58, 2  ;;  %v365_v12 = vmul.f32 %v3676_v62, %v3590_v30 }
 0x120   : > { %v1118_v40 = vadd.f32 %v1050_v26, %v873_v8  ;;  %v611_v60 = vmul.f32 %v3683_v46, %v3590_v30  ;;  %v1921_v28 = vadd.f32 %v1851_v13, %v1676_v38  ;;  %v1853_v18 = vrot.slane %v3802_v57, 2  ;;  %v3856_v13 = vld [vmem:[%s3974_s2] ss:$0 sm:$0xff] }
 0x121   : > { %v313_v24 = vmul.f32 %v3691_v47, %v3556_v48  ;;  %v926_v55 = vmul.f32 %v3698_v3, %v3707_v17  ;;  %v1609_v14 = vsel %vm417_vm0, %v1607_v22, %v1608_v5  ;;  %v491_v6 = vrot.slane %v365_v12, 1  ;;  %v277_v12 = vld [vmem:[%s2393_s7 + $0x1a0] sm:$0xff] }
 0x122   : > { %v1363_v2 = vadd.f32 %v1295_v44, %v1118_v40  ;;  %v737_v20 = vrot.slane %v611_v60, 2  ;;  %v1960_v61 = vadd.f32 %v3191_v23, %v1921_v28  ;;  %v842_v30 = vmul.f32 %v3712_v15, %v3650_v54  ;;  %v276_v44 = vld [vmem:[%s2393_s7 + $0x198] sm:$0xff] }
 0x123   : > { %v1051_v33 = vrot.slane %v926_v55, 1  ;;  %v1171_v45 = vmul.f32 %v3719_v1, %v3707_v17  ;;  %v492_v39 = vsel %vm417_vm0, %v489_v32, %v491_v6  ;;  %v1485_v56 = vmul.f32 %v3728_v34, %v3820_v16 }
 0x124   : > { %v1432_v48 = vadd.f32 %v1400_v35, %v1363_v2  ;;  %v738_v41 = vsel %vm663_vm1, %v735_v29, %v737_v20  ;;  %1992 = vst [vmem:[%s2551_s10 + $0xd8] sm:$0xff] %v1960_v61  ;;  %v1854_v23 = vsel %vm663_vm1, %v1852_v0, %v1853_v18  ;;  %v559_v10 = vadd.f32 %v492_v39, %v313_v24 }
 0x125   : > { %v1296_v51 = vrot.slane %v1171_v45, 2  ;;  %v1730_v52 = vmul.f32 %v3793_v63, %v3820_v16  ;;  %v1052_v27 = vsel %vm417_vm0, %v1049_v4, %v1051_v33  ;;  %v1401_v32 = vmul.f32 %v3742_v49, %v3781_v53 }
 0x126   : > { %v1677_v9 = vadd.f32 %v1609_v14, %v1432_v48  ;;  %v366_v29 = vmul.f32 %v3676_v62, %v3645_v59  ;;  %v805_v19 = vadd.f32 %v738_v41, %v559_v10  ;;  %v1610_v25 = vrot.slane %v1485_v56, 1 }
 0x127   : > { %v314_v50 = vmul.f32 %v3691_v47, %v3645_v59  ;;  %v3845_v42 = vmul.f32 %v3676_v62, %v3650_v54  ;;  %v1297_v11 = vsel %vm663_vm1, %v1294_v21, %v1296_v51  ;;  %v612_v7 = vmul.f32 %v3683_v46, %v3645_v59 }
 0x128   : > { %v1922_v43 = vadd.f32 %v1854_v23, %v1677_v9  ;;  %v493_v4 = vrot.slane %v366_v29, 1  ;;  %v874_v37 = vadd.f32 %v842_v30, %v805_v19  ;;  %v1855_v26 = vrot.slane %v1730_v52, 2 }
 0x129   : > { %v494_v36 = vrot.slane %v3845_v42, 1  ;;  %v613_v58 = vmul.f32 %v3683_v46, %v3650_v54  ;;  %v739_v8 = vrot.slane %v612_v7, 2  ;;  %v843_v22 = vmul.f32 %v3712_v15, %v3777_v31 }
 0x12a   : > { %v1961_v21 = vadd.f32 %v3856_v13, %v1922_v43  ;;  %v927_v59 = vmul.f32 %v3698_v3, %v3777_v31  ;;  %v1119_v38 = vadd.f32 %v1052_v27, %v874_v37  ;;  %v928_v0 = vmul.f32 %v3698_v3, %v3781_v53 }
 0x12b   : > { %v495_v35 = vsel %vm417_vm0, %v493_v4, %v494_v36  ;;  %v740_v40 = vrot.slane %v613_v58, 2  ;;  %v1172_v24 = vmul.f32 %v3719_v1, %v3777_v31  ;;  %v1173_v55 = vmul.f32 %v3719_v1, %v3781_v53 }
 0x12c   : > { %1993 = vst [vmem:[%s2551_s10 + $0xe0] sm:$0xff] %v1961_v21  ;;  %v560_v60 = vadd.f32 %v495_v35, %v314_v50  ;;  %v1053_v28 = vrot.slane %v927_v59, 1  ;;  %v1364_v2 = vadd.f32 %v1297_v11, %v1119_v38  ;;  %v1611_v14 = vsel %vm417_vm0, %v1608_v5, %v1610_v25 }
 0x12d   : > { %v741_v6 = vsel %vm663_vm1, %v739_v8, %v740_v40  ;;  %v1054_v20 = vrot.slane %v928_v0, 1  ;;  %v1298_v30 = vrot.slane %v1172_v24, 2  ;;  %v1299_v33 = vrot.slane %v1173_v55, 2 }
 0x12e   : > { %v806_v61 = vadd.f32 %v741_v6, %v560_v60  ;;  %v1486_v45 = vmul.f32 %v3728_v34, %v276_v44  ;;  %v1433_v48 = vadd.f32 %v1401_v32, %v1364_v2  ;;  %v1487_v41 = vmul.f32 %v3728_v34, %v277_v12 }
 0x12f   : > { %v1055_v39 = vsel %vm417_vm0, %v1053_v28, %v1054_v20  ;;  %v1731_v31 = vmul.f32 %v3793_v63, %v276_v44  ;;  %v1856_v56 = vsel %vm663_vm1, %v1853_v18, %v1855_v26  ;;  %v1402_v23 = vmul.f32 %v3742_v49, %v276_v44 }
 0x130   : > { %v875_v5 = vadd.f32 %v843_v22, %v806_v61  ;;  %v1732_v10 = vmul.f32 %v3793_v63, %v277_v12  ;;  %v1678_v51 = vadd.f32 %v1611_v14, %v1433_v48  ;;  %v1300_v52 = vsel %vm663_vm1, %v1298_v30, %v1299_v33 }
 0x131   : > { %v1612_v9 = vrot.slane %v1486_v45, 1  ;;  %v1613_v27 = vrot.slane %v1487_v41, 1  ;;  %v1857_v29 = vrot.slane %v1731_v31, 2  ;;  %v368_v19 = vmul.f32 %v3676_v62, %v3707_v17  ;;  %v278_v62 = vld [vmem:[%s2393_s7 + $0x1a8] sm:$0x3]  ;;  %s2141_s7 = sshll.u32 %s2290_s15, 12 }
 0x132   : > { %v1120_v32 = vadd.f32 %v1055_v39, %v875_v5  ;;  %v614_v57 = vmul.f32 %v3683_v46, %v3707_v17  ;;  %v1923_v18 = vadd.f32 %v1856_v56, %v1678_v51  ;;  %v1858_v25 = vrot.slane %v1732_v10, 2  ;;  %s3918_s18 = scalar_lea.hbm %s3975_s3, %s2141_s7  ;;  %s2300_s15 = smov [#allocation2]  }
 0x133   : > { %v315_v50 = vmul.f32 %v3691_v47, %v3650_v54  ;;  %v929_v42 = vmul.f32 %v3698_v3, %v3820_v16  ;;  %v496_v11 = vrot.slane %v368_v19, 1  ;;  %v1614_v37 = vsel %vm417_vm0, %v1612_v9, %v1613_v27  ;;  %s2224_s23 = sshll.u32 %s2300_s15, 4  ;;  %s2225_s23 = int_to_ptr.vmem [resolvable:$false] %s2224_s23 }
 0x134   : > { %v1365_v43 = vadd.f32 %v1300_v52, %v1120_v32  ;;  %v742_v4 = vrot.slane %v614_v57, 2  ;;  %v1962_v7 = vadd.f32 %v3856_v13, %v1923_v18  ;;  %v1174_v46 = vmul.f32 %v3719_v1, %v3820_v16  ;;  %s2226_s26 = scalar_lea.vmem %s2225_s23, 8192  ;;  %p2227_p1 = scmp.lt.s32.totalorder %s3920_s8, %s2225_s23 }
 0x135   : > { %v497_v26 = vsel %vm417_vm0, %v494_v36, %v496_v11  ;;  %v1056_v54 = vrot.slane %v929_v42, 1  ;;  %v1859_v47 = vsel %vm663_vm1, %v1857_v29, %v1858_v25  ;;  %v844_v21 = vmul.f32 %v3712_v15, %v3781_v53  ;;  %p2228_p2 = scmp.lt.s32.totalorder %s2226_s26, %s2220_s21 }
 0x136   : > { %v1434_v17 = vadd.f32 %v1402_v23, %v1365_v43  ;;  %v743_v58 = vsel %vm663_vm1, %v740_v40, %v742_v4  ;;  %1994 = vst [vmem:[%s2551_s10 + $0xe8] sm:$0xff] %v1962_v7  ;;  %v561_v3 = vadd.f32 %v497_v26, %v315_v50  ;;  %v1301_v22 = vrot.slane %v1174_v46, 2 }
 0x137   : > { %v1488_v59 = vmul.f32 %v3728_v34, %v278_v62  ;;  %v1057_v16 = vsel %vm417_vm0, %v1054_v20, %v1056_v54  ;;  %v1733_v36 = vmul.f32 %v3793_v63, %v278_v62  ;;  %v1403_v53 = vmul.f32 %v3742_v49, %v277_v12  ;;  %p2229_p3 = por %p2228_p2, %p2227_p1 }
 0x138   : > { %v1679_v8 = vadd.f32 %v1614_v37, %v1434_v17  ;;  %v807_v38 = vadd.f32 %v743_v58, %v561_v3  ;;  %v1302_v40 = vsel %vm663_vm1, %v1299_v33, %v1301_v22 }
 0x139   : > { %v1615_v0 = vrot.slane %v1488_v59, 1  ;;  %v1860_v34 = vrot.slane %v1733_v36, 2  ;;  %p2230_p5 = pnand %p2229_p3, %p2223_p0 }
 0x13a   : > { %v1924_v1 = vadd.f32 %v1859_v47, %v1679_v8  ;;  %v876_v44 = vadd.f32 %v844_v21, %v807_v38 }
 0x13b   : > { %v1616_v28 = vsel %vm417_vm0, %v1613_v27, %v1615_v0  ;;  %v1861_v63 = vsel %vm663_vm1, %v1858_v25, %v1860_v34 }
 0x13c   : > { %v1963_v35 = vadd.f32 %v3856_v13, %v1924_v1  ;;  %v1121_v15 = vadd.f32 %v1057_v16, %v876_v44 }
 0x13e   : > { %1995 = vst [vmem:[%s2551_s10 + $0xf0] sm:$0xff] %v1963_v35  ;;  %v1366_v60 = vadd.f32 %v1302_v40, %v1121_v15 }
 0x140   : > { %v1435_v24 = vadd.f32 %v1403_v53, %v1366_v60 }
 0x142   : > { %v1680_v55 = vadd.f32 %v1616_v28, %v1435_v24 }
 0x144   : > { %v1925_v2 = vadd.f32 %v1861_v63, %v1680_v55 }
 0x146   : > { %v1964_v49 = vadd.f32 %v3856_v13, %v1925_v2 }
 0x148   : > { %1996 = vst [vmem:[%s2551_s10 + $0xf8] sm:$0xff] %v1964_v49 }
 0x149   : > { %2233 = shalt.err (!%p2230_p5)
}
 0x14a   : > { %s2234_s5 = scalar_lea.hbm %s3918_s18, 4096  ;;  %s2238_s28 = scalar_lea.hbm %s3975_s3, 8192 }
 0x14b   : > { %p2235_p6 = scmp.ne.s32.totalorder %s3918_s18, %s2234_s5  ;;  %p2239_p10 = scmp.lt.u32.totalorder %s3918_s18, %s3975_s3 }
 0x14c   : > { %p2240_p11 = scmp.lt.u32.totalorder %s2238_s28, %s2234_s5  ;;  %p2242_p13 = scmp.lt.u32.totalorder %s2234_s5, %s3918_s18 }
 0x14d   : > { %p2236_p7 = pnand %p2235_p6, %p2363_p4 }
 0x14e   : > { %p2241_p12 = por %p2240_p11, %p2239_p10 }
 0x14f   : > { %p2237_p9 = pneg %p2236_p7 }
 0x150   : > { %p2243_p0 = por %p2242_p13, %p2241_p12 }
 0x152   : > { %p2244_p1 = pnand %p2243_p0, %p2237_p9 }
 0x154   : > { %2247 = shalt.err (!%p2244_p1)
}
 0x155   : > { %s2301_s4 = smov 128   ;;  %s2302_s6 = smov 8  }
 0x156   : > { %2143 = dma.vmem_to_hbm [thread:$0]  (%p2363_p4), %s3920_s8, 4096, %s3918_s18, %s3926_s19, %s2301_s4, %s2301_s4, %s2302_s6  }
 0x157 PF: > { %p2149_p2 = scmp.ge.s32.totalorder %s2298_s17, 2  ;;  %s2027_s7 = sand.u32 1, %s2278_s12  }
 0x158   : > { %s2028_s9 = scalar_lea.sflag [#allocation3], %s2027_s7 }
 0x159   : > { %p2146_p3 = pnand %p2149_p2, %p2370_p8 }
 0x15b   : > { %2273 = dma.done.wait (!%p2146_p3), %s2028_s9, 4096  }
 0x15c   : > { %2275 = vsyncadd (!%p2146_p3), %s2028_s9, 4294963200  ;;  %s16_s17 = sadd.s32 1, %s2298_s17   ;;  %s3978_s12 = smov %s2282_s13 }
 0x15d   : > { %p13_p5 = scmp.ge.s32.totalorder %s16_s17, 4   ;;  %s3979_s13 = smov %s2286_s14 }
 0x15e   : > { %s3980_s14 = smov %s2376_s25  ;;  %s3981_s15 = smov %s2294_s16 }
 0x15f   : > { %s3982_s16 = smov %s3984_s20  ;;  %15 = sbr.rel (!%p13_p5) target bundleno = 4 (0x4), region = 73 }
 0x166   :  { %2033 = vsyncpa [#allocation3], 1 }
 0x167   :  { %2035 = vsyncpa [#allocation3 + $0x1], 1 }

</bundles_post_ra>
